<compile_context>
chip_gen: v6e
topology: v6e:2x2x1
jax: 0.10.0
libtpu: 0.0.40
codegen_flags: <defaults>
</compile_context>

<pallas_src>
import functools
import math

import jax
import jax.numpy as jnp
from jax.experimental import pallas as pl
from jax.experimental.pallas import tpu as pltpu

NEG_INF = -1e29
SQRT_2_OVER_PI = math.sqrt(2.0 / math.pi)


def _gelu(x):
    # matches the torch tanh-approximation gelu in the reference module
    return 0.5 * x * (1.0 + jnp.tanh(SQRT_2_OVER_PI * (x + 0.044715 * x * x * x)))


def _biattention_kernel(s_ref, q_ref, smc_ref, qmr_ref, w_ref, b_ref,
                        s_out_ref, q_out_ref, *, matmul_dtype, use_longk):
    f32 = jnp.float32
    Bb, Ls, D = s_ref.shape
    Lq = q_ref.shape[1]

    S = s_ref[...]                       # [Bb, Ls, D]  (already matmul_dtype if wrapper cast)
    Q = q_ref[...]                       # [Bb, Lq, D]
    Sm = S if S.dtype == matmul_dtype else S.astype(matmul_dtype)
    Qm = Q if Q.dtype == matmul_dtype else Q.astype(matmul_dtype)

    # ---- bi-attention scores: ONE MXU pass, transposed scores via XLU transpose -----
    a = jnp.einsum('bsd,bqd->bsq', Sm, Qm, preferred_element_type=f32)   # [Bb, Ls, Lq]

    sm = smc_ref[...]                    # [Bb, Ls, 1]
    qm = qmr_ref[...]                    # [Bb, 1, Lq]
    # exactly equivalent to  W + (1 - jm) * NEG_INF  for {0,1} masks (torch semantics,
    # including fully-masked rows); broadcast AND + select of a constant, no outer mul.
    a = a + jnp.where((sm > 0.0) & (qm > 0.0), 0.0, NEG_INF)
    at = jnp.swapaxes(a, -1, -2)         # [Bb, Lq, Ls]  -- XLU, saves a full MXU matmul

    def softmax(w):                      # row softmax in f32, denominator on the EUP
        w = w - jnp.max(w, axis=-1, keepdims=True)
        e = jnp.exp(w)
        return e * pl.reciprocal(jnp.sum(e, axis=-1, keepdims=True), approx=True)

    pa = softmax(a)                      # [Bb, Ls, Lq]
    pat = softmax(at)                    # [Bb, Lq, Ls]

    Bm = jnp.einsum('bsq,bqd->bsd', pa.astype(matmul_dtype), Qm,
                    preferred_element_type=f32)                          # [Bb, Ls, D]
    Cm = jnp.einsum('bqs,bsd->bqd', pat.astype(matmul_dtype), Sm,
                    preferred_element_type=f32)                          # [Bb, Lq, D]

    # ---- FusionBlock: both directions merged into ONE projection (stacked along M) ---
    Ms, Mq = Bb * Ls, Bb * Lq
    x2 = jnp.concatenate([S.reshape(Ms, D).astype(f32),
                          Q.reshape(Mq, D).astype(f32)], axis=0)         # [M, D]
    y2 = jnp.concatenate([Bm.reshape(Ms, D), Cm.reshape(Mq, D)], axis=0)  # [M, D]
    xy2 = x2 * y2                        # shared by r and g, computed once

    b_row = b_ref[...]                   # [1, 2D]  (= b_r | b_g)

    if use_longk:
        # lane-aligned D: single long-K MXU pass  [M, 3D] x [3D, 2D]
        Wv = w_ref[...]
        Wv = Wv if Wv.dtype == matmul_dtype else Wv.astype(matmul_dtype)
        cat = jnp.concatenate([x2, y2, xy2], axis=-1).astype(matmul_dtype)
        proj = jnp.dot(cat, Wv, preferred_element_type=f32)
    else:
        # three ref-sliced matmuls accumulated (no [M, 3D] concat temp; MRB-friendly)
        proj = (jnp.dot(x2.astype(matmul_dtype), w_ref[0 * D:1 * D, :],
                        preferred_element_type=f32)
                + jnp.dot(y2.astype(matmul_dtype), w_ref[1 * D:2 * D, :],
                          preferred_element_type=f32)
                + jnp.dot(xy2.astype(matmul_dtype), w_ref[2 * D:3 * D, :],
                          preferred_element_type=f32))
    proj = proj + b_row                                  # [M, 2D]

    r = _gelu(proj[:, :D])                               # r half
    g = 0.5 * (1.0 + jnp.tanh(0.5 * proj[:, D:]))        # stable sigmoid, single EUP op
    o = g * r + (1.0 - g) * x2                           # [M, D]

    s_out_ref[...] = o[:Ms].reshape(Bb, Ls, D).astype(s_out_ref.dtype)
    q_out_ref[...] = o[Ms:].reshape(Bb, Lq, D).astype(q_out_ref.dtype)


def _fold_fusion_params(params, D):
    """[4D, D] r/g weights -> merged [3D, 2D] weight + [1, 2D] bias (x-y block folded).

    cat([x, y, x*y, x-y]) @ W == x @ (Wx + Wd) + y @ (Wy - Wd) + (x*y) @ Wxy
    """
    def fold(w):
        wx, wy, wxy, wd = w[:D], w[D:2 * D], w[2 * D:3 * D], w[3 * D:]
        return jnp.concatenate([wx + wd, wy - wd, wxy], axis=0)          # [3D, D]
    w_fold = jnp.concatenate([fold(params['wr']), fold(params['wg'])], axis=1)  # [3D, 2D]
    b_fold = jnp.concatenate([params['br'], params['bg']]).reshape(1, 2 * D)    # [1, 2D]
    return w_fold, b_fold


def _pick_block_b(Bsz, Ls, Lq, D, in_itemsize, vmem_budget, weight_bytes,
                  min_grid_steps=1):
    """Batch elements folded into one grid step, from a generation-aware VMEM budget."""
    if Ls % 8 or Lq % 8:
        return 1  # keep in-kernel [Bb, L, D] -> [Bb*L, D] reshapes / M-stacking layout-trivial
    L = Ls + Lq
    per_b = (
        2 * 2 * L * D * in_itemsize      # S/Q input tiles, double-buffered
        + 2 * 2 * L * D * 4              # output tiles (f32), double-buffered
        + 2 * L * D * 4                  # Bm / Cm (f32)
        + 3 * L * D * 4                  # stacked x2 / y2 / xy2 (f32)
        + 3 * L * D * in_itemsize        # long-K concat temp (worst case)
        + 2 * L * 2 * D * 4              # proj + r/g temps
        + 5 * Ls * Lq * 4                # a, mask bias, at, pa, pat score slabs
    )
    budget = max(vmem_budget - 2 * weight_bytes - (2 << 20), 1 << 20)
    bb = int(max(1, min(Bsz, budget // max(per_b, 1))))
    bb = min(bb, max(1, Bsz // max(min_grid_steps, 1)))   # feed both TCs on v7x
    while Bsz % bb:
        bb -= 1
    return bb


def biattention_block(S, Q, S_mask, Q_mask, params, *,
                      matmul_dtype=jnp.bfloat16, block_b=None):
    Bsz, Ls, D = S.shape
    _, Lq, _ = Q.shape
    out_dtype = S.dtype

    # ---- generation-aware budgets ----------------------------------------------------
    try:
        vmem_cap = int(pltpu.get_tpu_info().vmem_capacity_bytes)
    except Exception:
        vmem_cap = 128 * 1024 * 1024
    try:
        is_v7 = "7" in jax.devices()[0].device_kind
    except Exception:
        is_v7 = False
    vmem_limit = min(int(vmem_cap * 0.75), 112 * 1024 * 1024)

    w_fold, b_fold = _fold_fusion_params(params, D)
    m_itemsize = jnp.dtype(matmul_dtype).itemsize
    weight_bytes = 3 * D * 2 * D * m_itemsize + 2 * D * 4
    use_longk = (D % 128 == 0) and not is_v7   # v7x: prefer 3-way accumulate (MRB, less VMEM)

    if block_b is None:
        block_b = _pick_block_b(Bsz, Ls, Lq, D, m_itemsize, vmem_limit, weight_bytes,
                                min_grid_steps=2 if is_v7 else 1)
    assert Bsz % block_b == 0
    nb = Bsz // block_b

    # wrapper-side casts: halve S/Q/W DMA bytes and remove in-kernel cast passes
    S_in = S if S.dtype == matmul_dtype else S.astype(matmul_dtype)
    Q_in = Q if Q.dtype == matmul_dtype else Q.astype(matmul_dtype)
    w_in = w_fold if w_fold.dtype == matmul_dtype else w_fold.astype(matmul_dtype)
    b_in = b_fold.astype(jnp.float32)

    # only two mask inputs: S column (for the joint mask) and Q row (lane-dense)
    sm_col = S_mask.reshape(Bsz, Ls, 1).astype(jnp.float32)
    qm_row = Q_mask.reshape(Bsz, 1, Lq).astype(jnp.float32)

    kernel = functools.partial(_biattention_kernel, matmul_dtype=matmul_dtype,
                               use_longk=use_longk)

    def _call(buffered_consts):
        const_kw = dict(pipeline_mode=pl.Buffered(1)) if buffered_consts else {}
        grid_spec = pltpu.PrefetchScalarGridSpec(
            num_scalar_prefetch=0,
            grid=(nb,),
            in_specs=[
                pl.BlockSpec((block_b, Ls, D), lambda b: (b, 0, 0)),     # S
                pl.BlockSpec((block_b, Lq, D), lambda b: (b, 0, 0)),     # Q
                pl.BlockSpec((block_b, Ls, 1), lambda b: (b, 0, 0)),     # S_mask column
                pl.BlockSpec((block_b, 1, Lq), lambda b: (b, 0, 0)),     # Q_mask row
                # constants across the grid: single-buffered to halve weight VMEM
                pl.BlockSpec((3 * D, 2 * D), lambda b: (0, 0), **const_kw),  # folded W (r|g)
                pl.BlockSpec((1, 2 * D), lambda b: (0, 0), **const_kw),      # folded bias
            ],
            out_specs=[
                pl.BlockSpec((block_b, Ls, D), lambda b: (b, 0, 0)),     # S_tilde
                pl.BlockSpec((block_b, Lq, D), lambda b: (b, 0, 0)),     # Q_tilde
            ],
        )
        return pl.pallas_call(
            kernel,
            out_shape=(jax.ShapeDtypeStruct((Bsz, Ls, D), out_dtype),
                       jax.ShapeDtypeStruct((Bsz, Lq, D), out_dtype)),
            grid_spec=grid_spec,
            compiler_params=pltpu.CompilerParams(
                dimension_semantics=("parallel",),
                vmem_limit_bytes=vmem_limit,
            ),
        )(S_in, Q_in, sm_col, qm_row, w_in, b_in)

    try:
        return _call(True)
    except Exception:
        # fallback if this JAX build rejects Buffered(1) on constant-index inputs
        return _call(False)


def reference(S, Q, S_mask, Q_mask, params):
    # pure-JAX mirror of the torch forward (self_attention=False), unfused formulation
    a = jnp.einsum('bsd,bqd->bsq', S, Q)
    jm = S_mask[:, :, None] * Q_mask[:, None, :]

    def msoft(W, m):
        return jax.nn.softmax(W + (1.0 - m) * NEG_INF, axis=-1)

    Bm = msoft(a, jm) @ Q
    Cm = msoft(jnp.swapaxes(a, -1, -2), jnp.swapaxes(jm, -1, -2)) @ S

    def fusion(x, y):
        inp = jnp.concatenate([x, y, x * y, x - y], axis=-1)
        r = _gelu(inp @ params['wr'] + params['br'])
        g = jax.nn.sigmoid(inp @ params['wg'] + params['bg'])
        return g * r + (1.0 - g) * x

    return fusion(S, Bm), fusion(Q, Cm)


if __name__ == "__main__":
    hidden_size = 16
    D = 2 * hidden_size        # feature dim of S/Q
    Bsz, Ls, Lq = 2, 16, 8

    key = jax.random.PRNGKey(0)
    k_s, k_q, k_wr, k_br, k_wg, k_bg = jax.random.split(key, 6)

    S = jax.random.normal(k_s, (Bsz, Ls, D), dtype=jnp.float32)
    Q = jax.random.normal(k_q, (Bsz, Lq, D), dtype=jnp.float32)

    # masks: 1 = valid, 0 = padded (deterministic pattern)
    S_mask = jnp.ones((Bsz, Ls), dtype=jnp.float32).at[1, 12:].set(0.0)
    Q_mask = jnp.ones((Bsz, Lq), dtype=jnp.float32).at[0, 6:].set(0.0)

    # FusionBlock params: Linear(8*hidden -> 2*hidden), stored transposed [in, out] = [4D, D]
    params = {
        'wr': 0.05 * jax.random.normal(k_wr, (4 * D, D), dtype=jnp.float32),
        'br': 0.05 * jax.random.normal(k_br, (D,), dtype=jnp.float32),
        'wg': 0.05 * jax.random.normal(k_wg, (4 * D, D), dtype=jnp.float32),
        'bg': 0.05 * jax.random.normal(k_bg, (D,), dtype=jnp.float32),
    }

    s_want, q_want = reference(S, Q, S_mask, Q_mask, params)

    # f32 MXU operands (reference parity; tolerance covers the EUP approx reciprocal)
    s_f32, q_f32 = biattention_block(S, Q, S_mask, Q_mask, params,
                                     matmul_dtype=jnp.float32)
    jax.block_until_ready((s_f32, q_f32))
    assert jnp.allclose(s_f32, s_want, rtol=2e-2, atol=2e-2), "S_tilde mismatch (f32)"
    assert jnp.allclose(q_f32, q_want, rtol=2e-2, atol=2e-2), "Q_tilde mismatch (f32)"

    # default bf16 MXU operands / f32 accumulation (v6e/v7x fast path) -- loose bound
    s_bf, q_bf = biattention_block(S, Q, S_mask, Q_mask, params)
    jax.block_until_ready((s_bf, q_bf))
    assert jnp.all(jnp.isfinite(s_bf)) and jnp.all(jnp.isfinite(q_bf))
    assert jnp.allclose(s_bf, s_want, rtol=1.5e-1, atol=1.5e-1), "S_tilde mismatch (bf16)"
    assert jnp.allclose(q_bf, q_want, rtol=1.5e-1, atol=1.5e-1), "Q_tilde mismatch (bf16)"

    print("KERNEL_OK")
</pallas_src>

<mosaic_0001>
module attributes {stable_mosaic.version = 11 : i64} {
  func.func @_biattention_kernel(%arg0: i32, %arg1: memref<2x16x32xf32, #tpu.memory_space<vmem>>, %arg2: memref<2x8x32xf32, #tpu.memory_space<vmem>>, %arg3: memref<2x16x1xf32, #tpu.memory_space<vmem>>, %arg4: memref<2x1x8xf32, #tpu.memory_space<vmem>>, %arg5: memref<96x64xf32, #tpu.memory_space<vmem>>, %arg6: memref<1x64xf32, #tpu.memory_space<vmem>>, %arg7: memref<2x16x32xf32, #tpu.memory_space<vmem>>, %arg8: memref<2x8x32xf32, #tpu.memory_space<vmem>>) attributes {dimension_semantics = [#tpu.dimension_semantics<parallel>], iteration_bounds = array<i64: 1>, scalar_prefetch = 0 : i64, scratch_operands = 0 : i64, tpu.core_type = #tpu.core_type<tc>, window_params = [{transform_indices = @transform_0, window_bounds = array<i64: 2, 16, 32>}, {transform_indices = @transform_1, window_bounds = array<i64: 2, 8, 32>}, {transform_indices = @transform_2, window_bounds = array<i64: 2, 16, 1>}, {transform_indices = @transform_3, window_bounds = array<i64: 2, 1, 8>}, {pipeline_mode = #tpu.pipeline_mode<synchronous>, transform_indices = @transform_4, window_bounds = array<i64: 96, 64>}, {pipeline_mode = #tpu.pipeline_mode<synchronous>, transform_indices = @transform_5, window_bounds = array<i64: 1, 64>}, {transform_indices = @transform_6, window_bounds = array<i64: 2, 16, 32>}, {transform_indices = @transform_7, window_bounds = array<i64: 2, 8, 32>}]} {
    %c0 = arith.constant 0 : index
    %c0_0 = arith.constant 0 : index
    %c0_1 = arith.constant 0 : index
    %0 = vector.load %arg1[%c0, %c0_0, %c0_1] : memref<2x16x32xf32, #tpu.memory_space<vmem>>, vector<2x16x32xf32>
    %c0_2 = arith.constant 0 : index
    %c0_3 = arith.constant 0 : index
    %c0_4 = arith.constant 0 : index
    %1 = vector.load %arg2[%c0_2, %c0_3, %c0_4] : memref<2x8x32xf32, #tpu.memory_space<vmem>>, vector<2x8x32xf32>
    "tpu.trace_start"() <{level = 10 : i32, message = "bsd,bqd->bsq"}> : () -> ()
    %cst = arith.constant dense<0.000000e+00> : vector<2x16x8xf32>
    %2 = tpu.matmul %0, %1, %cst {dimension_numbers = #tpu.dot_dimension_numbers<[2], [2], [1], [1], [0, 0, 0, 1, 1, 1], [0], [0]>} : vector<2x16x32xf32>, vector<2x8x32xf32>, vector<2x16x8xf32> -> vector<2x16x8xf32>
    "tpu.trace_stop"() : () -> ()
    %c0_5 = arith.constant 0 : index
    %c0_6 = arith.constant 0 : index
    %c0_7 = arith.constant 0 : index
    %3 = vector.load %arg3[%c0_5, %c0_6, %c0_7] : memref<2x16x1xf32, #tpu.memory_space<vmem>>, vector<2x16x1xf32>
    %c0_8 = arith.constant 0 : index
    %c0_9 = arith.constant 0 : index
    %c0_10 = arith.constant 0 : index
    %4 = vector.load %arg4[%c0_8, %c0_9, %c0_10] : memref<2x1x8xf32, #tpu.memory_space<vmem>>, vector<2x1x8xf32>
    %cst_11 = arith.constant 0.000000e+00 : f32
    %5 = vector.broadcast %cst_11 : f32 to vector<2x16x1xf32>
    %6 = arith.cmpf ogt, %3, %5 : vector<2x16x1xf32>
    %cst_12 = arith.constant 0.000000e+00 : f32
    %7 = vector.broadcast %cst_12 : f32 to vector<2x1x8xf32>
    %8 = arith.cmpf ogt, %4, %7 : vector<2x1x8xf32>
    %9 = vector.broadcast %6 : vector<2x16x1xi1> to vector<2x16x8xi1>
    %10 = vector.broadcast %8 : vector<2x1x8xi1> to vector<2x16x8xi1>
    %11 = arith.andi %9, %10 : vector<2x16x8xi1>
    %cst_13 = arith.constant 0.000000e+00 : f32
    %cst_14 = arith.constant -1.000000e+29 : f32
    %12 = vector.broadcast %cst_13 : f32 to vector<2x16x8xf32>
    %13 = vector.broadcast %cst_14 : f32 to vector<2x16x8xf32>
    %14 = arith.select %11, %12, %13 : vector<2x16x8xi1>, vector<2x16x8xf32>
    %15 = arith.addf %2, %14 : vector<2x16x8xf32>
    %16 = tpu.transpose %15, [0, 2, 1] : vector<2x16x8xf32> -> vector<2x8x16xf32>
    %cst_15 = arith.constant dense<0xFF800000> : vector<2x16xf32>
    %17 = vector.multi_reduction <maximumf>, %15, %cst_15 [2] : vector<2x16x8xf32> to vector<2x16xf32>
    %18 = vector.shape_cast %17 : vector<2x16xf32> to vector<2x16x1xf32>
    %19 = vector.broadcast %18 : vector<2x16x1xf32> to vector<2x16x8xf32>
    %20 = arith.subf %15, %19 : vector<2x16x8xf32>
    %21 = math.exp %20 : vector<2x16x8xf32>
    %cst_16 = arith.constant dense<0.000000e+00> : vector<2x16xf32>
    %22 = vector.multi_reduction <add>, %21, %cst_16 [2] : vector<2x16x8xf32> to vector<2x16xf32>
    %23 = vector.shape_cast %22 : vector<2x16xf32> to vector<2x16x1xf32>
    %24 = tpu.reciprocal %23 {approx = true} : vector<2x16x1xf32> -> vector<2x16x1xf32>
    %25 = vector.broadcast %24 : vector<2x16x1xf32> to vector<2x16x8xf32>
    %26 = arith.mulf %21, %25 : vector<2x16x8xf32>
    %cst_17 = arith.constant dense<0xFF800000> : vector<2x8xf32>
    %27 = vector.multi_reduction <maximumf>, %16, %cst_17 [2] : vector<2x8x16xf32> to vector<2x8xf32>
    %28 = vector.shape_cast %27 : vector<2x8xf32> to vector<2x8x1xf32>
    %29 = vector.broadcast %28 : vector<2x8x1xf32> to vector<2x8x16xf32>
    %30 = arith.subf %16, %29 : vector<2x8x16xf32>
    %31 = math.exp %30 : vector<2x8x16xf32>
    %cst_18 = arith.constant dense<0.000000e+00> : vector<2x8xf32>
    %32 = vector.multi_reduction <add>, %31, %cst_18 [2] : vector<2x8x16xf32> to vector<2x8xf32>
    %33 = vector.shape_cast %32 : vector<2x8xf32> to vector<2x8x1xf32>
    %34 = tpu.reciprocal %33 {approx = true} : vector<2x8x1xf32> -> vector<2x8x1xf32>
    %35 = vector.broadcast %34 : vector<2x8x1xf32> to vector<2x8x16xf32>
    %36 = arith.mulf %31, %35 : vector<2x8x16xf32>
    "tpu.trace_start"() <{level = 10 : i32, message = "bsq,bqd->bsd"}> : () -> ()
    %cst_19 = arith.constant dense<0.000000e+00> : vector<2x16x32xf32>
    %37 = tpu.matmul %26, %1, %cst_19 {dimension_numbers = #tpu.dot_dimension_numbers<[2], [1], [1], [2], [0, 0, 0, 1, 1, 2], [0], [0]>} : vector<2x16x8xf32>, vector<2x8x32xf32>, vector<2x16x32xf32> -> vector<2x16x32xf32>
    "tpu.trace_stop"() : () -> ()
    "tpu.trace_start"() <{level = 10 : i32, message = "bqs,bsd->bqd"}> : () -> ()
    %cst_20 = arith.constant dense<0.000000e+00> : vector<2x8x32xf32>
    %38 = tpu.matmul %36, %0, %cst_20 {dimension_numbers = #tpu.dot_dimension_numbers<[2], [1], [1], [2], [0, 0, 0, 1, 1, 2], [0], [0]>} : vector<2x8x16xf32>, vector<2x16x32xf32>, vector<2x8x32xf32> -> vector<2x8x32xf32>
    "tpu.trace_stop"() : () -> ()
    %39 = vector.shape_cast %0 : vector<2x16x32xf32> to vector<32x32xf32>
    %40 = vector.shape_cast %1 : vector<2x8x32xf32> to vector<16x32xf32>
    %41 = tpu.concatenate %39, %40 in 0 : vector<32x32xf32>, vector<16x32xf32> -> vector<48x32xf32>
    %42 = vector.shape_cast %37 : vector<2x16x32xf32> to vector<32x32xf32>
    %43 = vector.shape_cast %38 : vector<2x8x32xf32> to vector<16x32xf32>
    %44 = tpu.concatenate %42, %43 in 0 : vector<32x32xf32>, vector<16x32xf32> -> vector<48x32xf32>
    %45 = arith.mulf %41, %44 : vector<48x32xf32>
    %c0_21 = arith.constant 0 : index
    %c0_22 = arith.constant 0 : index
    %46 = vector.load %arg6[%c0_21, %c0_22] : memref<1x64xf32, #tpu.memory_space<vmem>>, vector<1x64xf32>
    %c0_23 = arith.constant 0 : index
    %c0_24 = arith.constant 0 : index
    %47 = vector.load %arg5[%c0_23, %c0_24] : memref<96x64xf32, #tpu.memory_space<vmem>>, vector<32x64xf32>
    %cst_25 = arith.constant dense<0.000000e+00> : vector<48x64xf32>
    %48 = tpu.matmul %41, %47, %cst_25 {dimension_numbers = #tpu.dot_dimension_numbers<[1], [0], [0], [1], [0, 0, 1, 1], [], []>} : vector<48x32xf32>, vector<32x64xf32>, vector<48x64xf32> -> vector<48x64xf32>
    %c32 = arith.constant 32 : index
    %c0_26 = arith.constant 0 : index
    %49 = vector.load %arg5[%c32, %c0_26] : memref<96x64xf32, #tpu.memory_space<vmem>>, vector<32x64xf32>
    %cst_27 = arith.constant dense<0.000000e+00> : vector<48x64xf32>
    %50 = tpu.matmul %44, %49, %cst_27 {dimension_numbers = #tpu.dot_dimension_numbers<[1], [0], [0], [1], [0, 0, 1, 1], [], []>} : vector<48x32xf32>, vector<32x64xf32>, vector<48x64xf32> -> vector<48x64xf32>
    %51 = arith.addf %48, %50 : vector<48x64xf32>
    %c64 = arith.constant 64 : index
    %c0_28 = arith.constant 0 : index
    %52 = vector.load %arg5[%c64, %c0_28] : memref<96x64xf32, #tpu.memory_space<vmem>>, vector<32x64xf32>
    %cst_29 = arith.constant dense<0.000000e+00> : vector<48x64xf32>
    %53 = tpu.matmul %45, %52, %cst_29 {dimension_numbers = #tpu.dot_dimension_numbers<[1], [0], [0], [1], [0, 0, 1, 1], [], []>} : vector<48x32xf32>, vector<32x64xf32>, vector<48x64xf32> -> vector<48x64xf32>
    %54 = arith.addf %51, %53 : vector<48x64xf32>
    %55 = vector.broadcast %46 : vector<1x64xf32> to vector<48x64xf32>
    %56 = arith.addf %54, %55 : vector<48x64xf32>
    %57 = vector.extract_strided_slice %56 {offsets = [0, 0], sizes = [48, 32], strides = [1, 1]} : vector<48x64xf32> to vector<48x32xf32>
    %cst_30 = arith.constant 5.000000e-01 : f32
    %58 = vector.broadcast %cst_30 : f32 to vector<48x32xf32>
    %59 = arith.mulf %58, %57 : vector<48x32xf32>
    %cst_31 = arith.constant 4.471500e-02 : f32
    %60 = vector.broadcast %cst_31 : f32 to vector<48x32xf32>
    %61 = arith.mulf %60, %57 : vector<48x32xf32>
    %62 = arith.mulf %61, %57 : vector<48x32xf32>
    %63 = arith.mulf %62, %57 : vector<48x32xf32>
    %64 = arith.addf %57, %63 : vector<48x32xf32>
    %cst_32 = arith.constant 0.797884583 : f32
    %65 = vector.broadcast %cst_32 : f32 to vector<48x32xf32>
    %66 = arith.mulf %65, %64 : vector<48x32xf32>
    %67 = math.tanh %66 : vector<48x32xf32>
    %cst_33 = arith.constant 1.000000e+00 : f32
    %68 = vector.broadcast %cst_33 : f32 to vector<48x32xf32>
    %69 = arith.addf %68, %67 : vector<48x32xf32>
    %70 = arith.mulf %59, %69 : vector<48x32xf32>
    %71 = vector.extract_strided_slice %56 {offsets = [0, 32], sizes = [48, 32], strides = [1, 1]} : vector<48x64xf32> to vector<48x32xf32>
    %cst_34 = arith.constant 5.000000e-01 : f32
    %72 = vector.broadcast %cst_34 : f32 to vector<48x32xf32>
    %73 = arith.mulf %72, %71 : vector<48x32xf32>
    %74 = math.tanh %73 : vector<48x32xf32>
    %cst_35 = arith.constant 1.000000e+00 : f32
    %75 = vector.broadcast %cst_35 : f32 to vector<48x32xf32>
    %76 = arith.addf %75, %74 : vector<48x32xf32>
    %cst_36 = arith.constant 5.000000e-01 : f32
    %77 = vector.broadcast %cst_36 : f32 to vector<48x32xf32>
    %78 = arith.mulf %77, %76 : vector<48x32xf32>
    %79 = arith.mulf %78, %70 : vector<48x32xf32>
    %cst_37 = arith.constant 1.000000e+00 : f32
    %80 = vector.broadcast %cst_37 : f32 to vector<48x32xf32>
    %81 = arith.subf %80, %78 : vector<48x32xf32>
    %82 = arith.mulf %81, %41 : vector<48x32xf32>
    %83 = arith.addf %79, %82 : vector<48x32xf32>
    %84 = vector.extract_strided_slice %83 {offsets = [0, 0], sizes = [32, 32], strides = [1, 1]} : vector<48x32xf32> to vector<32x32xf32>
    %85 = vector.shape_cast %84 : vector<32x32xf32> to vector<2x16x32xf32>
    %c0_38 = arith.constant 0 : index
    %c0_39 = arith.constant 0 : index
    %c0_40 = arith.constant 0 : index
    %86 = vector.load %arg7[%c0_38, %c0_39, %c0_40] : memref<2x16x32xf32, #tpu.memory_space<vmem>>, vector<2x16x32xf32>
    tpu.vector_store %arg7[%c0_38, %c0_39, %c0_40], %85 {strides = array<i32>} : memref<2x16x32xf32, #tpu.memory_space<vmem>>, vector<2x16x32xf32>,
    %87 = vector.extract_strided_slice %83 {offsets = [32, 0], sizes = [16, 32], strides = [1, 1]} : vector<48x32xf32> to vector<16x32xf32>
    %88 = vector.shape_cast %87 : vector<16x32xf32> to vector<2x8x32xf32>
    %c0_41 = arith.constant 0 : index
    %c0_42 = arith.constant 0 : index
    %c0_43 = arith.constant 0 : index
    %89 = vector.load %arg8[%c0_41, %c0_42, %c0_43] : memref<2x8x32xf32, #tpu.memory_space<vmem>>, vector<2x8x32xf32>
    tpu.vector_store %arg8[%c0_41, %c0_42, %c0_43], %88 {strides = array<i32>} : memref<2x8x32xf32, #tpu.memory_space<vmem>>, vector<2x8x32xf32>,
    return
  }
  func.func @transform_0(%arg0: i32) -> (i32, i32, i32) {
    %c0_i32 = arith.constant 0 : i32
    %c0_i32_0 = arith.constant 0 : i32
    %c0_i32_1 = arith.constant 0 : i32
    return %arg0, %c0_i32, %c0_i32_0 : i32, i32, i32
  }
  func.func @transform_1(%arg0: i32) -> (i32, i32, i32) {
    %c0_i32 = arith.constant 0 : i32
    %c0_i32_0 = arith.constant 0 : i32
    %c0_i32_1 = arith.constant 0 : i32
    return %arg0, %c0_i32, %c0_i32_0 : i32, i32, i32
  }
  func.func @transform_2(%arg0: i32) -> (i32, i32, i32) {
    %c0_i32 = arith.constant 0 : i32
    %c0_i32_0 = arith.constant 0 : i32
    %c0_i32_1 = arith.constant 0 : i32
    return %arg0, %c0_i32, %c0_i32_0 : i32, i32, i32
  }
  func.func @transform_3(%arg0: i32) -> (i32, i32, i32) {
    %c0_i32 = arith.constant 0 : i32
    %c0_i32_0 = arith.constant 0 : i32
    %c0_i32_1 = arith.constant 0 : i32
    return %arg0, %c0_i32, %c0_i32_0 : i32, i32, i32
  }
  func.func @transform_4(%arg0: i32) -> (i32, i32) {
    %c0_i32 = arith.constant 0 : i32
    %c0_i32_0 = arith.constant 0 : i32
    %c0_i32_1 = arith.constant 0 : i32
    return %c0_i32, %c0_i32_0 : i32, i32
  }
  func.func @transform_5(%arg0: i32) -> (i32, i32) {
    %c0_i32 = arith.constant 0 : i32
    %c0_i32_0 = arith.constant 0 : i32
    %c0_i32_1 = arith.constant 0 : i32
    return %c0_i32, %c0_i32_0 : i32, i32
  }
  func.func @transform_6(%arg0: i32) -> (i32, i32, i32) {
    %c0_i32 = arith.constant 0 : i32
    %c0_i32_0 = arith.constant 0 : i32
    %c0_i32_1 = arith.constant 0 : i32
    return %arg0, %c0_i32, %c0_i32_0 : i32, i32, i32
  }
  func.func @transform_7(%arg0: i32) -> (i32, i32, i32) {
    %c0_i32 = arith.constant 0 : i32
    %c0_i32_0 = arith.constant 0 : i32
    %c0_i32_1 = arith.constant 0 : i32
    return %arg0, %c0_i32, %c0_i32_0 : i32, i32, i32
  }
}

module attributes {stable_mosaic.version = 11 : i64} {
  func.func @_biattention_kernel(%arg0: i32, %arg1: memref<2x16x32xf32, #tpu.memory_space<vmem>>, %arg2: memref<2x8x32xf32, #tpu.memory_space<vmem>>, %arg3: memref<2x16x1xf32, #tpu.memory_space<vmem>>, %arg4: memref<2x1x8xf32, #tpu.memory_space<vmem>>, %arg5: memref<96x64xf32, #tpu.memory_space<vmem>>, %arg6: memref<1x64xf32, #tpu.memory_space<vmem>>, %arg7: memref<2x16x32xf32, #tpu.memory_space<vmem>>, %arg8: memref<2x8x32xf32, #tpu.memory_space<vmem>>) attributes {dimension_semantics = [#tpu.dimension_semantics<parallel>], iteration_bounds = array<i64: 1>, scalar_prefetch = 0 : i64, scratch_operands = 0 : i64, tpu.core_type = #tpu.core_type<tc>, window_params = [{transform_indices = @transform_0, window_bounds = array<i64: 2, 16, 32>}, {transform_indices = @transform_1, window_bounds = array<i64: 2, 8, 32>}, {transform_indices = @transform_2, window_bounds = array<i64: 2, 16, 1>}, {transform_indices = @transform_3, window_bounds = array<i64: 2, 1, 8>}, {pipeline_mode = #tpu.pipeline_mode<synchronous>, transform_indices = @transform_4, window_bounds = array<i64: 96, 64>}, {pipeline_mode = #tpu.pipeline_mode<synchronous>, transform_indices = @transform_5, window_bounds = array<i64: 1, 64>}, {transform_indices = @transform_6, window_bounds = array<i64: 2, 16, 32>}, {transform_indices = @transform_7, window_bounds = array<i64: 2, 8, 32>}]} {
    %c0 = arith.constant 0 : index
    %c0_0 = arith.constant 0 : index
    %c0_1 = arith.constant 0 : index
    %0 = vector.load %arg1[%c0, %c0_0, %c0_1] : memref<2x16x32xf32, #tpu.memory_space<vmem>>, vector<2x16x32xf32>
    %c0_2 = arith.constant 0 : index
    %c0_3 = arith.constant 0 : index
    %c0_4 = arith.constant 0 : index
    %1 = vector.load %arg2[%c0_2, %c0_3, %c0_4] : memref<2x8x32xf32, #tpu.memory_space<vmem>>, vector<2x8x32xf32>
    "tpu.trace_start"() <{level = 10 : i32, message = "bsd,bqd->bsq"}> : () -> ()
    %cst = arith.constant dense<0.000000e+00> : vector<2x16x8xf32>
    %2 = tpu.matmul %0, %1, %cst {dimension_numbers = #tpu.dot_dimension_numbers<[2], [2], [1], [1], [0, 0, 0, 1, 1, 1], [0], [0]>} : vector<2x16x32xf32>, vector<2x8x32xf32>, vector<2x16x8xf32> -> vector<2x16x8xf32>
    "tpu.trace_stop"() : () -> ()
    %c0_5 = arith.constant 0 : index
    %c0_6 = arith.constant 0 : index
    %c0_7 = arith.constant 0 : index
    %3 = vector.load %arg3[%c0_5, %c0_6, %c0_7] : memref<2x16x1xf32, #tpu.memory_space<vmem>>, vector<2x16x1xf32>
    %c0_8 = arith.constant 0 : index
    %c0_9 = arith.constant 0 : index
    %c0_10 = arith.constant 0 : index
    %4 = vector.load %arg4[%c0_8, %c0_9, %c0_10] : memref<2x1x8xf32, #tpu.memory_space<vmem>>, vector<2x1x8xf32>
    %cst_11 = arith.constant 0.000000e+00 : f32
    %5 = vector.broadcast %cst_11 : f32 to vector<2x16x1xf32>
    %6 = arith.cmpf ogt, %3, %5 : vector<2x16x1xf32>
    %cst_12 = arith.constant 0.000000e+00 : f32
    %7 = vector.broadcast %cst_12 : f32 to vector<2x1x8xf32>
    %8 = arith.cmpf ogt, %4, %7 : vector<2x1x8xf32>
    %9 = vector.broadcast %6 : vector<2x16x1xi1> to vector<2x16x8xi1>
    %10 = vector.broadcast %8 : vector<2x1x8xi1> to vector<2x16x8xi1>
    %11 = arith.andi %9, %10 : vector<2x16x8xi1>
    %cst_13 = arith.constant 0.000000e+00 : f32
    %cst_14 = arith.constant -1.000000e+29 : f32
    %12 = vector.broadcast %cst_13 : f32 to vector<2x16x8xf32>
    %13 = vector.broadcast %cst_14 : f32 to vector<2x16x8xf32>
    %14 = arith.select %11, %12, %13 : vector<2x16x8xi1>, vector<2x16x8xf32>
    %15 = arith.addf %2, %14 : vector<2x16x8xf32>
    %16 = tpu.transpose %15, [0, 2, 1] : vector<2x16x8xf32> -> vector<2x8x16xf32>
    %cst_15 = arith.constant dense<0xFF800000> : vector<2x16xf32>
    %17 = vector.multi_reduction <maximumf>, %15, %cst_15 [2] : vector<2x16x8xf32> to vector<2x16xf32>
    %18 = vector.shape_cast %17 : vector<2x16xf32> to vector<2x16x1xf32>
    %19 = vector.broadcast %18 : vector<2x16x1xf32> to vector<2x16x8xf32>
    %20 = arith.subf %15, %19 : vector<2x16x8xf32>
    %21 = math.exp %20 : vector<2x16x8xf32>
    %cst_16 = arith.constant dense<0.000000e+00> : vector<2x16xf32>
    %22 = vector.multi_reduction <add>, %21, %cst_16 [2] : vector<2x16x8xf32> to vector<2x16xf32>
    %23 = vector.shape_cast %22 : vector<2x16xf32> to vector<2x16x1xf32>
    %24 = tpu.reciprocal %23 {approx = true} : vector<2x16x1xf32> -> vector<2x16x1xf32>
    %25 = vector.broadcast %24 : vector<2x16x1xf32> to vector<2x16x8xf32>
    %26 = arith.mulf %21, %25 : vector<2x16x8xf32>
    %cst_17 = arith.constant dense<0xFF800000> : vector<2x8xf32>
    %27 = vector.multi_reduction <maximumf>, %16, %cst_17 [2] : vector<2x8x16xf32> to vector<2x8xf32>
    %28 = vector.shape_cast %27 : vector<2x8xf32> to vector<2x8x1xf32>
    %29 = vector.broadcast %28 : vector<2x8x1xf32> to vector<2x8x16xf32>
    %30 = arith.subf %16, %29 : vector<2x8x16xf32>
    %31 = math.exp %30 : vector<2x8x16xf32>
    %cst_18 = arith.constant dense<0.000000e+00> : vector<2x8xf32>
    %32 = vector.multi_reduction <add>, %31, %cst_18 [2] : vector<2x8x16xf32> to vector<2x8xf32>
    %33 = vector.shape_cast %32 : vector<2x8xf32> to vector<2x8x1xf32>
    %34 = tpu.reciprocal %33 {approx = true} : vector<2x8x1xf32> -> vector<2x8x1xf32>
    %35 = vector.broadcast %34 : vector<2x8x1xf32> to vector<2x8x16xf32>
    %36 = arith.mulf %31, %35 : vector<2x8x16xf32>
    "tpu.trace_start"() <{level = 10 : i32, message = "bsq,bqd->bsd"}> : () -> ()
    %cst_19 = arith.constant dense<0.000000e+00> : vector<2x16x32xf32>
    %37 = tpu.matmul %26, %1, %cst_19 {dimension_numbers = #tpu.dot_dimension_numbers<[2], [1], [1], [2], [0, 0, 0, 1, 1, 2], [0], [0]>} : vector<2x16x8xf32>, vector<2x8x32xf32>, vector<2x16x32xf32> -> vector<2x16x32xf32>
    "tpu.trace_stop"() : () -> ()
    "tpu.trace_start"() <{level = 10 : i32, message = "bqs,bsd->bqd"}> : () -> ()
    %cst_20 = arith.constant dense<0.000000e+00> : vector<2x8x32xf32>
    %38 = tpu.matmul %36, %0, %cst_20 {dimension_numbers = #tpu.dot_dimension_numbers<[2], [1], [1], [2], [0, 0, 0, 1, 1, 2], [0], [0]>} : vector<2x8x16xf32>, vector<2x16x32xf32>, vector<2x8x32xf32> -> vector<2x8x32xf32>
    "tpu.trace_stop"() : () -> ()
    %39 = vector.shape_cast %0 : vector<2x16x32xf32> to vector<32x32xf32>
    %40 = vector.shape_cast %1 : vector<2x8x32xf32> to vector<16x32xf32>
    %41 = tpu.concatenate %39, %40 in 0 : vector<32x32xf32>, vector<16x32xf32> -> vector<48x32xf32>
    %42 = vector.shape_cast %37 : vector<2x16x32xf32> to vector<32x32xf32>
    %43 = vector.shape_cast %38 : vector<2x8x32xf32> to vector<16x32xf32>
    %44 = tpu.concatenate %42, %43 in 0 : vector<32x32xf32>, vector<16x32xf32> -> vector<48x32xf32>
    %45 = arith.mulf %41, %44 : vector<48x32xf32>
    %c0_21 = arith.constant 0 : index
    %c0_22 = arith.constant 0 : index
    %46 = vector.load %arg6[%c0_21, %c0_22] : memref<1x64xf32, #tpu.memory_space<vmem>>, vector<1x64xf32>
    %c0_23 = arith.constant 0 : index
    %c0_24 = arith.constant 0 : index
    %47 = vector.load %arg5[%c0_23, %c0_24] : memref<96x64xf32, #tpu.memory_space<vmem>>, vector<32x64xf32>
    %cst_25 = arith.constant dense<0.000000e+00> : vector<48x64xf32>
    %48 = tpu.matmul %41, %47, %cst_25 {dimension_numbers = #tpu.dot_dimension_numbers<[1], [0], [0], [1], [0, 0, 1, 1], [], []>} : vector<48x32xf32>, vector<32x64xf32>, vector<48x64xf32> -> vector<48x64xf32>
    %c32 = arith.constant 32 : index
    %c0_26 = arith.constant 0 : index
    %49 = vector.load %arg5[%c32, %c0_26] : memref<96x64xf32, #tpu.memory_space<vmem>>, vector<32x64xf32>
    %cst_27 = arith.constant dense<0.000000e+00> : vector<48x64xf32>
    %50 = tpu.matmul %44, %49, %cst_27 {dimension_numbers = #tpu.dot_dimension_numbers<[1], [0], [0], [1], [0, 0, 1, 1], [], []>} : vector<48x32xf32>, vector<32x64xf32>, vector<48x64xf32> -> vector<48x64xf32>
    %51 = arith.addf %48, %50 : vector<48x64xf32>
    %c64 = arith.constant 64 : index
    %c0_28 = arith.constant 0 : index
    %52 = vector.load %arg5[%c64, %c0_28] : memref<96x64xf32, #tpu.memory_space<vmem>>, vector<32x64xf32>
    %cst_29 = arith.constant dense<0.000000e+00> : vector<48x64xf32>
    %53 = tpu.matmul %45, %52, %cst_29 {dimension_numbers = #tpu.dot_dimension_numbers<[1], [0], [0], [1], [0, 0, 1, 1], [], []>} : vector<48x32xf32>, vector<32x64xf32>, vector<48x64xf32> -> vector<48x64xf32>
    %54 = arith.addf %51, %53 : vector<48x64xf32>
    %55 = vector.broadcast %46 : vector<1x64xf32> to vector<48x64xf32>
    %56 = arith.addf %54, %55 : vector<48x64xf32>
    %57 = vector.extract_strided_slice %56 {offsets = [0, 0], sizes = [48, 32], strides = [1, 1]} : vector<48x64xf32> to vector<48x32xf32>
    %cst_30 = arith.constant 5.000000e-01 : f32
    %58 = vector.broadcast %cst_30 : f32 to vector<48x32xf32>
    %59 = arith.mulf %58, %57 : vector<48x32xf32>
    %cst_31 = arith.constant 4.471500e-02 : f32
    %60 = vector.broadcast %cst_31 : f32 to vector<48x32xf32>
    %61 = arith.mulf %60, %57 : vector<48x32xf32>
    %62 = arith.mulf %61, %57 : vector<48x32xf32>
    %63 = arith.mulf %62, %57 : vector<48x32xf32>
    %64 = arith.addf %57, %63 : vector<48x32xf32>
    %cst_32 = arith.constant 0.797884583 : f32
    %65 = vector.broadcast %cst_32 : f32 to vector<48x32xf32>
    %66 = arith.mulf %65, %64 : vector<48x32xf32>
    %67 = math.tanh %66 : vector<48x32xf32>
    %cst_33 = arith.constant 1.000000e+00 : f32
    %68 = vector.broadcast %cst_33 : f32 to vector<48x32xf32>
    %69 = arith.addf %68, %67 : vector<48x32xf32>
    %70 = arith.mulf %59, %69 : vector<48x32xf32>
    %71 = vector.extract_strided_slice %56 {offsets = [0, 32], sizes = [48, 32], strides = [1, 1]} : vector<48x64xf32> to vector<48x32xf32>
    %cst_34 = arith.constant 5.000000e-01 : f32
    %72 = vector.broadcast %cst_34 : f32 to vector<48x32xf32>
    %73 = arith.mulf %72, %71 : vector<48x32xf32>
    %74 = math.tanh %73 : vector<48x32xf32>
    %cst_35 = arith.constant 1.000000e+00 : f32
    %75 = vector.broadcast %cst_35 : f32 to vector<48x32xf32>
    %76 = arith.addf %75, %74 : vector<48x32xf32>
    %cst_36 = arith.constant 5.000000e-01 : f32
    %77 = vector.broadcast %cst_36 : f32 to vector<48x32xf32>
    %78 = arith.mulf %77, %76 : vector<48x32xf32>
    %79 = arith.mulf %78, %70 : vector<48x32xf32>
    %cst_37 = arith.constant 1.000000e+00 : f32
    %80 = vector.broadcast %cst_37 : f32 to vector<48x32xf32>
    %81 = arith.subf %80, %78 : vector<48x32xf32>
    %82 = arith.mulf %81, %41 : vector<48x32xf32>
    %83 = arith.addf %79, %82 : vector<48x32xf32>
    %84 = vector.extract_strided_slice %83 {offsets = [0, 0], sizes = [32, 32], strides = [1, 1]} : vector<48x32xf32> to vector<32x32xf32>
    %85 = vector.shape_cast %84 : vector<32x32xf32> to vector<2x16x32xf32>
    %c0_38 = arith.constant 0 : index
    %c0_39 = arith.constant 0 : index
    %c0_40 = arith.constant 0 : index
    %86 = vector.load %arg7[%c0_38, %c0_39, %c0_40] : memref<2x16x32xf32, #tpu.memory_space<vmem>>, vector<2x16x32xf32>
    tpu.vector_store %arg7[%c0_38, %c0_39, %c0_40], %85 {strides = array<i32>} : memref<2x16x32xf32, #tpu.memory_space<vmem>>, vector<2x16x32xf32>,
    %87 = vector.extract_strided_slice %83 {offsets = [32, 0], sizes = [16, 32], strides = [1, 1]} : vector<48x32xf32> to vector<16x32xf32>
    %88 = vector.shape_cast %87 : vector<16x32xf32> to vector<2x8x32xf32>
    %c0_41 = arith.constant 0 : index
    %c0_42 = arith.constant 0 : index
    %c0_43 = arith.constant 0 : index
    %89 = vector.load %arg8[%c0_41, %c0_42, %c0_43] : memref<2x8x32xf32, #tpu.memory_space<vmem>>, vector<2x8x32xf32>
    tpu.vector_store %arg8[%c0_41, %c0_42, %c0_43], %88 {strides = array<i32>} : memref<2x8x32xf32, #tpu.memory_space<vmem>>, vector<2x8x32xf32>,
    return
  }
  func.func @transform_0(%arg0: i32) -> (i32, i32, i32) {
    %c0_i32 = arith.constant 0 : i32
    %c0_i32_0 = arith.constant 0 : i32
    %c0_i32_1 = arith.constant 0 : i32
    return %arg0, %c0_i32, %c0_i32_0 : i32, i32, i32
  }
  func.func @transform_1(%arg0: i32) -> (i32, i32, i32) {
    %c0_i32 = arith.constant 0 : i32
    %c0_i32_0 = arith.constant 0 : i32
    %c0_i32_1 = arith.constant 0 : i32
    return %arg0, %c0_i32, %c0_i32_0 : i32, i32, i32
  }
  func.func @transform_2(%arg0: i32) -> (i32, i32, i32) {
    %c0_i32 = arith.constant 0 : i32
    %c0_i32_0 = arith.constant 0 : i32
    %c0_i32_1 = arith.constant 0 : i32
    return %arg0, %c0_i32, %c0_i32_0 : i32, i32, i32
  }
  func.func @transform_3(%arg0: i32) -> (i32, i32, i32) {
    %c0_i32 = arith.constant 0 : i32
    %c0_i32_0 = arith.constant 0 : i32
    %c0_i32_1 = arith.constant 0 : i32
    return %arg0, %c0_i32, %c0_i32_0 : i32, i32, i32
  }
  func.func @transform_4(%arg0: i32) -> (i32, i32) {
    %c0_i32 = arith.constant 0 : i32
    %c0_i32_0 = arith.constant 0 : i32
    %c0_i32_1 = arith.constant 0 : i32
    return %c0_i32, %c0_i32_0 : i32, i32
  }
  func.func @transform_5(%arg0: i32) -> (i32, i32) {
    %c0_i32 = arith.constant 0 : i32
    %c0_i32_0 = arith.constant 0 : i32
    %c0_i32_1 = arith.constant 0 : i32
    return %c0_i32, %c0_i32_0 : i32, i32
  }
  func.func @transform_6(%arg0: i32) -> (i32, i32, i32) {
    %c0_i32 = arith.constant 0 : i32
    %c0_i32_0 = arith.constant 0 : i32
    %c0_i32_1 = arith.constant 0 : i32
    return %arg0, %c0_i32, %c0_i32_0 : i32, i32, i32
  }
  func.func @transform_7(%arg0: i32) -> (i32, i32, i32) {
    %c0_i32 = arith.constant 0 : i32
    %c0_i32_0 = arith.constant 0 : i32
    %c0_i32_1 = arith.constant 0 : i32
    return %arg0, %c0_i32, %c0_i32_0 : i32, i32, i32
  }
}

</mosaic_0001>

<bundles_post_ra>
// kernel: tpu_custom_call.1
= control target key start
LH: loop header
LB: loop body
LE: loop exit
PB: predicated region body
PF: predicated region fallthrough
CT: control target
= control target key end

     0   :  { %13 = vsyncpa [#allocation3], 0  ;;  %vm85_vm0 = vcmask 261120   ;;  %v1520_v4 = vmov 0   ;;  %s1767_s0 = inlined_call_operand.vmem [shape: f32[2,16,32], index: 0, kind: input, shape index: {}]   ;;  %s1768_s1 = inlined_call_operand.vmem [shape: f32[2,8,32], index: 1, kind: input, shape index: {}]   ;;  %s1769_s2 = inlined_call_operand.vmem [shape: f32[2,16,1], index: 2, kind: input, shape index: {}]   ;;  %s1770_s3 = inlined_call_operand.vmem [shape: f32[2,1,8], index: 3, kind: input, shape index: {}]   ;;  %s1771_s4 = inlined_call_operand.vmem [shape: f32[96,64], index: 4, kind: input, shape index: {}]   ;;  %s1772_s5 = inlined_call_operand.vmem [shape: f32[1,64], index: 5, kind: input, shape index: {}]   ;;  %s1773_s6 = inlined_call_operand.hbm [shape: f32[2,16,32], index: 6, kind: output, shape index: {0}]   ;;  %s1774_s7 = inlined_call_operand.hbm [shape: f32[2,8,32], index: 7, kind: output, shape index: {1}]  }
   0x1   :  { %v1573_v0 = vld [vmem:[%s1768_s1] sm:$0xff]  ;;  %v1587_v2 = vld [vmem:[%s1767_s0 + $0x8] sm:$0xff]  ;;  %1427 = vset.pattern.permute.xlu1 %v1520_v4  ;;  %v36_v6 = vld [vmem:[%s1769_s2 + $0x18] sm:$0xff]  ;;  %1426 = vset.pattern.permute.xlu0 %v1520_v4 }
   0x2   :  { %v1578_v1 = vld [vmem:[%s1767_s0] sm:$0xff]  ;;  %1331 = vmatprep.subr.msk.mxu1 %vm85_vm0, %v1573_v0  ;;  %v1592_v3 = vld [vmem:[%s1768_s1 + $0x8] sm:$0xff]  ;;  %v1610_v8 = vld [vmem:[%s1767_s0 + $0x10] sm:$0xff]  ;;  %vm42_vm2 = vcmp.gt.f32.partialorder %v36_v6, 0.0  ;;  %1341 = vmatprep.subr.mxu0 %v1573_v0 }
   0x3   :  { %1333 = vmatprep.mubr.msk.f32.mxu1 %vm85_vm0, %v1578_v1  ;;  %1332 = vmatpush3.xpose.msk.msra.mxu1 %vm85_vm0, %v1573_v0  ;;  %v34_v5 = vld [vmem:[%s1769_s2 + $0x8] sm:$0xff]  ;;  %v33_v7 = vld [vmem:[%s1769_s2] sm:$0xff]  ;;  %v35_v9 = vld [vmem:[%s1769_s2 + $0x10] sm:$0xff] }
   0x4   :  { %1336 = vmatprep.subr.msk.mxu1 %vm85_vm0, %v1592_v3  ;;  %vm40_vm1 = vcmp.gt.f32.partialorder %v34_v5, 0.0  ;;  %vm39_vm3 = vcmp.gt.f32.partialorder %v33_v7, 0.0  ;;  %vm41_vm4 = vcmp.gt.f32.partialorder %v35_v9, 0.0 }
   0x5   :  { %v46_v10 = vsel %vm40_vm1, 1, %v1520_v4  ;;  %v45_v11 = vsel %vm39_vm3, 1, %v1520_v4 }
   0x6   :  { %1334 = vmatmul.mubr.msk.f32.vlgmr.msra.gmra.mxu1 %vm85_vm0, %v1587_v2  ;;  %53 = vperm.xlu1 %1427, %v46_v10  }
   0x7   :  { %14 = vsyncpa [#allocation5], 0  ;;  %1337 = vmatpush3.xpose.msk.msra.mxu1 %vm85_vm0, %v1592_v3  ;;  %1338 = vmatprep.mubr.msk.f32.mxu1 %vm85_vm0, %v1610_v8  ;;  %v1625_v12 = vld [vmem:[%s1767_s0 + $0x18] sm:$0xff]  ;;  %v48_v13 = vsel %vm42_vm2, 1, %v1520_v4  ;;  %v47_v14 = vsel %vm41_vm4, 1, %v1520_v4  ;;  %v67_v15 = vlaneseq  ;;  %vm318_vm11 = vcmask 64512  }
   0x8   :  { %50 = vperm.xlu0 %1426, %v45_v11   ;;  %1342 = vmatpush3.msra.mxu0 %v1573_v0  ;;  %v37_v16 = vld [vmem:[%s1770_s3] sm:$0x1]  ;;  %v1521_v23 = vmov -1e+29   ;;  %v38_v32 = vld [vmem:[%s1770_s3 + $0x1] sm:$0x1] }
   0x9   :  { %1346 = vmatprep.subr.mxu1 %v1592_v3  ;;  %v68_v17 = vshrl.u32 %v67_v15, 7  ;;  %vm43_vm5 = vcmp.gt.f32.partialorder %v37_v16, 0.0  ;;  %vm44_vm12 = vcmp.gt.f32.partialorder %v38_v32, 0.0  ;;  %vm363_vm3 = vcmask 130048   ;;  %s1524_s20 = smov 32   ;;  %s1526_s21 = smov [#allocation2]  }
   0xa   :  { %1339 = vmatmul.mubr.msk.f32.vlgmr.msra.gmra.mxu1 %vm85_vm0, %v1625_v12  ;;  %59 = vperm.xlu1 %1427, %v48_v13   ;;  %v65_v19 = vsel %vm43_vm5, 1, %v1520_v4  ;;  %v66_v33 = vsel %vm44_vm12, 1, %v1520_v4  ;;  %vm1523_vm4 = vmmov 0   ;;  %s1225_s3 = sshll.u32 %s1526_s21, 4  ;;  %s1226_s3 = int_to_ptr.vmem [resolvable:$true] %s1225_s3 }
   0xb   :  { %1347 = vmatpush3.msra.mxu1 %v1592_v3  ;;  %v69_v18 = vsub.s32 0, %v68_v17  ;;  %s1476_s22 = scalar_lea.vmem %s1226_s3, 512  ;;  %p1481_p1 = scmp.lt.s32.totalorder %s1226_s3, %s1226_s3 }
   0xc   :  { %56 = vperm.xlu0 %1426, %v47_v14   ;;  %p1477_p0 = scmp.ne.s32.totalorder %s1226_s3, %s1476_s22  ;;  %p1482_p2 = scmp.lt.s32.totalorder %s1476_s22, %s1476_s22 }
   0xd   :  { %v70_v20 = vrot.slane %v65_v19, %v69_v18  ;;  %v74_v35 = vrot.slane %v66_v33, %v69_v18 }
   0xe   :  { %p1483_p3 = por %p1482_p2, %p1481_p1 }
   0xf   :  { %vm75_vm6 = vcmp.eq.s32.totalorder %v70_v20, 1  ;;  %vm76_vm14 = vcmp.eq.s32.totalorder %v74_v35, 1  ;;  %v704_v35 = vld [vmem:[%s1771_s4 + $0x18] sm:$0xff] }
  0x10   :  { %p1484_p4 = pnand %p1483_p3, %p1477_p0 }
  0x81   :  { %v54_v21 = vpop.permute.xlu1 %53 }
  0x82   :  { %vm62_vm7 = vcmp.eq.s32.totalorder %v54_v21, 1 }
  0x83   :  { %v51_v22 = vpop.permute.xlu0 %50  ;;  %vm78_vm9 = vmand %vm62_vm7, %vm75_vm6 }
  0x84   :  { %vm61_vm8 = vcmp.eq.s32.totalorder %v51_v22, 1  ;;  %v82_v24 = vsel %vm78_vm9, 0.0, %v1521_v23 }
  0x85   :  { %vm77_vm10 = vmand %vm61_vm8, %vm75_vm6  ;;  %v60_v37 = vpop.permute.xlu1 %59 }
  0x86   :  { %v81_v26 = vsel %vm77_vm10, 0.0, %v1521_v23  ;;  %vm64_vm1 = vcmp.eq.s32.totalorder %v60_v37, 1 }
  0x87   :  { %v57_v34 = vpop.permute.xlu0 %56  ;;  %vm80_vm2 = vmand %vm64_vm1, %vm76_vm14 }
  0x88   :  { %vm63_vm13 = vcmp.eq.s32.totalorder %v57_v34, 1  ;;  %v84_v41 = vsel %vm80_vm2, 0.0, %v1521_v23 }
  0x89   :  { %vm79_vm15 = vmand %vm63_vm13, %vm76_vm14 }
  0x8a   :  { %v83_v38 = vsel %vm79_vm15, 0.0, %v1521_v23 }
  0xc6   :  { %v1335_v25 = vpop.f32.mrf.mxu1 }
  0xc7   :  { %v167_v27 = vadd.f32 %v1335_v25, %v82_v24 }
  0xc8   :  { %v161_v28 = vpop.f32.mrf.mxu1 }
  0xc9   :  { %v162_v29 = vadd.f32 %v161_v28, %v81_v26  ;;  %v322_v30 = vsel %vm318_vm11, %v167_v27, -inf  ;;  %v708_v28 = vld [vmem:[%s1771_s4 + $0x38] sm:$0xff] }
  0xca   :  { %323 = vmax.xlane.f32.xlu1 %v322_v30  ;;  %v1340_v36 = vpop.f32.mrf.mxu1 }
  0xcb   :  { %v319_v31 = vsel %vm318_vm11, %v162_v29, -inf  ;;  %v251_v42 = vadd.f32 %v1340_v36, %v84_v41 }
  0xcc   :  { %320 = vmax.xlane.f32.xlu0 %v319_v31  ;;  %v245_v39 = vpop.f32.mrf.mxu1 }
  0xcd   :  { %v246_v40 = vadd.f32 %v245_v39, %v83_v38  ;;  %v328_v44 = vsel %vm318_vm11, %v251_v42, -inf }
  0xcf   :  { %v325_v43 = vsel %vm318_vm11, %v246_v40, -inf }
  0xf9   :  { %254 = vxpose.xlu0.b32.start [1/2] (short) (narrow) %v162_v29, 8 }
  0xfd   :  { %286 = vxpose.xlu1.b32.start [1/2] (short) (narrow) %v246_v40, 8  ;;  %255 = vxpose.xlu0.b32.end [2/2] (short) (narrow) %v167_v27, 8 }
 0x101   :  { %287 = vxpose.xlu1.b32.end [2/2] (short) (narrow) %v251_v42, 8 }
 0x12a   :  { %326 = vmax.xlane.f32.xlu0 %v325_v43 }
 0x12e   :  { %329 = vmax.xlane.f32.xlu0 %v328_v44  ;;  %v703_v44 = vld [vmem:[%s1771_s4 + $0x10] sm:$0xff] }
 0x153   :  { %v324_v47 = vpop.xlane.xlu1 %323 }
 0x154   :  { %v332_v48 = vsub.f32 %v167_v27, %v324_v47  ;;  %v1522_v27 = vmov 0.0   ;;  %v920_v47 = vld [vmem:[%s1771_s4 + $0x58] sm:$0xff] }
 0x155   :  { %v321_v45 = vpop.xlane.xlu0 %320  ;;  %1351 = vmatprep.subr.mxu0 %v1522_v27  ;;  %1358 = vmatprep.subr.mxu1 %v1522_v27 }
 0x156   :  { %v331_v46 = vsub.f32 %v162_v29, %v321_v45  ;;  %v337_v50 = vmul.f32 1.442695, %v332_v48  ;;  %v705_v45 = vld [vmem:[%s1771_s4 + $0x20] sm:$0xff] }
 0x157   :  { %v701_v48 = vld [vmem:[%s1771_s4] sm:$0xff] }
 0x158   :  { %v335_v49 = vmul.f32 1.442695, %v331_v46  ;;  %v702_v46 = vld [vmem:[%s1771_s4 + $0x8] sm:$0xff] }
 0x15a   :  { %1428 = vpow2.f32 %v335_v49 }
 0x15b   :  { %1430 = vpow2.f32 %v337_v50 }
 0x167   :  { %v1429_v53 = vpop.eup %1428 }
 0x168   :  { %v343_v56 = vsel %vm318_vm11, %v1429_v53, 0.0  ;;  %v1431_v57 = vpop.eup %1430 }
 0x169   :  { %v346_v58 = vsel %vm318_vm11, %v1431_v57, 0.0 }
 0x175   :  { %v270_v51 = vpop.trf.xlu0 }
 0x176   :  { %v364_v52 = vsel %vm363_vm3, %v270_v51, -inf }
 0x177   :  { %365 = vmax.xlane.f32.xlu1 %v364_v52  ;;  %v918_v52 = vld [vmem:[%s1771_s4 + $0x48] sm:$0xff] }
 0x179   :  { %v302_v54 = vpop.trf.xlu1 }
 0x17a   :  { %v367_v55 = vsel %vm363_vm3, %v302_v54, -inf }
 0x17b   :  { %368 = vmax.xlane.f32.xlu0 %v367_v55  ;;  %344 = vadd.xlane.f32.xlu1 %v343_v56 }
 0x17f   :  { %347 = vadd.xlane.f32.xlu0 %v346_v58 }
 0x1b3   :  { %v327_v59 = vpop.xlane.xlu0 %326 }
 0x1b4   :  { %v333_v60 = vsub.f32 %v246_v40, %v327_v59  ;;  %v707_v40 = vld [vmem:[%s1771_s4 + $0x30] sm:$0xff] }
 0x1b6   :  { %v339_v61 = vmul.f32 1.442695, %v333_v60 }
 0x1b7   :  { %v330_v62 = vpop.xlane.xlu0 %329 }
 0x1b8   :  { %1432 = vpow2.f32 %v339_v61  ;;  %v334_v63 = vsub.f32 %v251_v42, %v330_v62  ;;  %v706_v42 = vld [vmem:[%s1771_s4 + $0x28] sm:$0xff] }
 0x1ba   :  { %v341_v4 = vmul.f32 1.442695, %v334_v63 }
 0x1bc   :  { %1434 = vpow2.f32 %v341_v4 }
 0x1c5   :  { %v1433_v5 = vpop.eup %1432 }
 0x1c6   :  { %v349_v6 = vsel %vm318_vm11, %v1433_v5, 0.0 }
 0x1c7   :  { %350 = vadd.xlane.f32.xlu1 %v349_v6 }
 0x1c9   :  { %v1435_v7 = vpop.eup %1434 }
 0x1ca   :  { %v352_v9 = vsel %vm318_vm11, %v1435_v7, 0.0 }
 0x1cb   :  { %353 = vadd.xlane.f32.xlu0 %v352_v9 }
 0x200   :  { %v366_v10 = vpop.xlane.xlu1 %365 }
 0x201   :  { %v370_v11 = vsub.f32 %v270_v51, %v366_v10  ;;  %v919_v51 = vld [vmem:[%s1771_s4 + $0x50] sm:$0xff] }
 0x203   :  { %v372_v13 = vmul.f32 1.442695, %v370_v11 }
 0x204   :  { %v345_v14 = vpop.xlane.xlu1 %344  ;;  %v369_v15 = vpop.xlane.xlu0 %368 }
 0x205   :  { %1436 = vpow2.f32 %v372_v13  ;;  %v371_v16 = vsub.f32 %v302_v54, %v369_v15  ;;  %v1282_v15 = vld [vmem:[%s1772_s5] ss:$0 sm:$0xff]  ;;  %s1525_s5 = smov 96  }
 0x206   :  { %1438 = vrcp.f32 %v345_v14 }
 0x207   :  { %v374_v17 = vmul.f32 1.442695, %v371_v16 }
 0x208   :  { %v348_v18 = vpop.xlane.xlu0 %347 }
 0x209   :  { %1440 = vpow2.f32 %v374_v17 }
 0x20a   :  { %1442 = vrcp.f32 %v348_v18 }
 0x212   :  { %v1437_v19 = vpop.eup %1436 }
 0x213   :  { %v1439_v20 = vpop.eup %1438  ;;  %v376_v21 = vsel %vm363_vm3, %v1437_v19, 0.0 }
 0x214   :  { %377 = vadd.xlane.f32.xlu1 %v376_v21  ;;  %v359_v22 = vmul.f32 %v1439_v20, %v1429_v53  ;;  %v917_v53 = vld [vmem:[%s1771_s4 + $0x40] sm:$0xff] }
 0x216   :  { %v1441_v23 = vpop.eup %1440  ;;  %1343 = vmatprep.mubr.msk.f32.mxu0 %vm318_vm11, %v359_v22 }
 0x217   :  { %v1443_v24 = vpop.eup %1442  ;;  %v379_v25 = vsel %vm363_vm3, %v1441_v23, 0.0 }
 0x218   :  { %380 = vadd.xlane.f32.xlu0 %v379_v25  ;;  %v360_v26 = vmul.f32 %v1443_v24, %v1431_v57 }
 0x21a   :  { %1344 = vmatmul.mubr.msk.f32.vlgmr.msra.gmra.mxu0 %vm318_vm11, %v360_v26 }
 0x21b   :  { %1355 = vmatprep.mubr.msk.f32.mxu0 %vm1523_vm4, %v1522_v27  ;;  %1352 = vmatpush3.msra.mxu0 %v1587_v2 }
 0x21c   :  { %1353 = vmatprep.subr.mxu0 %v1522_v27 }
 0x21d   :  { %1354 = vmatpush3.msra.mxu0 %v1578_v1 }
 0x21e   :  { %1365 = vmatprep.subr.mxu0 %v708_v28 }
 0x225   :  { %1162 = vrot.lane.b32.xlu1 %v1587_v2, %s1524_s20 }
 0x229   :  { %1166 = vrot.lane.b32.xlu1 %v1625_v12, %s1524_s20 }
 0x22e   :  { %1160 = vrot.lane.b32.xlu0 %v1578_v1, %s1524_s20 }
 0x232   :  { %1164 = vrot.lane.b32.xlu0 %v1610_v8, %s1524_s20 }
 0x250   :  { %v351_v29 = vpop.xlane.xlu1 %350 }
 0x251   :  { %1444 = vrcp.f32 %v351_v29 }
 0x254   :  { %v354_v30 = vpop.xlane.xlu0 %353 }
 0x255   :  { %1446 = vrcp.f32 %v354_v30 }
 0x25e   :  { %v1445_v31 = vpop.eup %1444 }
 0x25f   :  { %v361_v32 = vmul.f32 %v1445_v31, %v1433_v5 }
 0x261   :  { %1348 = vmatprep.mubr.msk.f32.mxu1 %vm318_vm11, %v361_v32 }
 0x262   :  { %v1447_v33 = vpop.eup %1446 }
 0x263   :  { %v362_v34 = vmul.f32 %v1447_v33, %v1435_v7 }
 0x265   :  { %1349 = vmatmul.mubr.msk.f32.vlgmr.msra.gmra.mxu1 %vm318_vm11, %v362_v34 }
 0x266   :  { %1359 = vmatpush3.msra.mxu1 %v1625_v12  ;;  %1362 = vmatprep.mubr.msk.f32.mxu1 %vm1523_vm4, %v1522_v27 }
 0x267   :  { %1360 = vmatprep.subr.mxu1 %v1522_v27 }
 0x268   :  { %1361 = vmatpush3.msra.mxu1 %v1610_v8 }
 0x269   :  { %1382 = vmatprep.subr.mxu1 %v704_v35 }
 0x29d   :  { %v378_v36 = vpop.xlane.xlu1 %377 }
 0x29e   :  { %1448 = vrcp.f32 %v378_v36 }
 0x2a1   :  { %v381_v37 = vpop.xlane.xlu0 %380 }
 0x2a2   :  { %1450 = vrcp.f32 %v381_v37 }
 0x2ab   :  { %v1449_v38 = vpop.eup %1448 }
 0x2ac   :  { %v384_v39 = vmul.f32 %v1449_v38, %v1437_v19 }
 0x2ae   :  { %1356 = vmatmul.mubr.msk.f32.vlgmr.msra.gmra.mxu0 %vm363_vm3, %v384_v39 }
 0x2af   :  { %v1451_v41 = vpop.eup %1450  ;;  %1366 = vmatpush3.msra.mxu0 %v708_v28 }
 0x2b0   :  { %v385_v43 = vmul.f32 %v1451_v41, %v1441_v23  ;;  %1367 = vmatprep.subr.mxu0 %v707_v40 }
 0x2b1   :  { %1368 = vmatpush3.msra.mxu0 %v707_v40 }
 0x2b2   :  { %1363 = vmatmul.mubr.msk.f32.vlgmr.msra.gmra.mxu1 %vm363_vm3, %v385_v43  ;;  %1369 = vmatprep.subr.mxu0 %v706_v42 }
 0x2b3   :  { %1383 = vmatpush3.msra.mxu1 %v704_v35  ;;  %1370 = vmatpush3.msra.mxu0 %v706_v42 }
 0x2b4   :  { %1384 = vmatprep.subr.mxu1 %v703_v44  ;;  %1371 = vmatprep.subr.mxu0 %v705_v45 }
 0x2b5   :  { %1385 = vmatpush3.msra.mxu1 %v703_v44  ;;  %1372 = vmatpush3.msra.mxu0 %v705_v45 }
 0x2b6   :  { %1386 = vmatprep.subr.mxu1 %v702_v46  ;;  %1390 = vmatprep.mubr.msk.f32.mxu1 %vm85_vm0, %v1578_v1 }
 0x2b7   :  { %1387 = vmatpush3.msra.mxu1 %v702_v46  ;;  %1399 = vmatprep.subr.mxu0 %v920_v47 }
 0x2b8   :  { %1388 = vmatprep.subr.mxu1 %v701_v48 }
 0x2b9   :  { %1389 = vmatpush3.msra.mxu1 %v701_v48 }
 0x2ba   :  { %1391 = vmatmul.mubr.msk.f32.vlgmr.msra.gmra.mxu1 %vm85_vm0, %v1587_v2 }
 0x2bb   :  { %1393 = vmatprep.mubr.msk.f32.mxu1 %vm85_vm0, %v1610_v8 }
 0x2be   :  { %1394 = vmatmul.mubr.msk.f32.gmra.mxu1 %vm85_vm0, %v1625_v12 }
 0x2bf   :  { %1396 = vmatprep.mubr.msk.f32.mxu1 %vm85_vm0, %v1573_v0 }
 0x2c2   :  { %1397 = vmatmul.mubr.msk.f32.gmra.mxu1 %vm85_vm0, %v1592_v3 }
 0x2da   :  { %v1345_v49 = vpop.f32.mrf.mxu0 }
 0x2db   :  { %v695_v61 = vmul.f32 %v1345_v49, %v1587_v2 }
 0x2dc   :  { %v458_v50 = vpop.f32.mrf.mxu0 }
 0x2dd   :  { %1373 = vmatprep.mubr.msk.f32.mxu0 %vm85_vm0, %v458_v50  ;;  %v694_v58 = vmul.f32 %v458_v50, %v1578_v1 }
 0x2de   :  { %1374 = vmatmul.mubr.msk.f32.vlgmr.msra.gmra.mxu0 %vm85_vm0, %v1345_v49 }
 0x2df   :  { %1400 = vmatpush3.msra.mxu0 %v920_v47 }
 0x2e0   :  { %1401 = vmatprep.subr.mxu0 %v919_v51 }
 0x2e1   :  { %1402 = vmatpush3.msra.mxu0 %v919_v51 }
 0x2e2   :  { %1403 = vmatprep.subr.mxu0 %v918_v52 }
 0x2e3   :  { %1404 = vmatpush3.msra.mxu0 %v918_v52 }
 0x2e4   :  { %1405 = vmatprep.subr.mxu0 %v917_v53 }
 0x2e5   :  { %1406 = vmatpush3.msra.mxu0 %v917_v53 }
 0x325   :  { %v1350_v54 = vpop.f32.mrf.mxu1 }
 0x326   :  { %v697_v63 = vmul.f32 %v1350_v54, %v1625_v12 }
 0x327   :  { %v539_v55 = vpop.f32.mrf.mxu1 }
 0x328   :  { %1376 = vmatprep.mubr.msk.f32.mxu0 %vm85_vm0, %v539_v55  ;;  %v696_v62 = vmul.f32 %v539_v55, %v1610_v8 }
 0x329   :  { %1377 = vmatmul.mubr.msk.f32.gmra.mxu0 %vm85_vm0, %v1350_v54 }
 0x36e   :  { %v617_v56 = vpop.f32.mrf.mxu0 }
 0x36f   :  { %1379 = vmatprep.mubr.msk.f32.mxu0 %vm85_vm0, %v617_v56  ;;  %v698_v4 = vmul.f32 %v617_v56, %v1573_v0 }
 0x370   :  { %v1357_v57 = vpop.f32.mrf.mxu0 }
 0x372   :  { %v690_v59 = vpop.f32.mrf.mxu1 }
 0x373   :  { %1380 = vmatmul.mubr.msk.f32.gmra.mxu0 %vm85_vm0, %v690_v59  ;;  %v699_v1 = vmul.f32 %v690_v59, %v1592_v3 }
 0x374   :  { %v1364_v60 = vpop.f32.mrf.mxu1  ;;  %1407 = vmatprep.mubr.msk.f32.mxu0 %vm85_vm0, %v694_v58 }
 0x377   :  { %1408 = vmatmul.mubr.msk.f32.vlgmr.msra.gmra.mxu0 %vm85_vm0, %v695_v61 }
 0x378   :  { %1410 = vmatprep.mubr.msk.f32.mxu0 %vm85_vm0, %v696_v62 }
 0x37a   :  { %v1392_v6 = vpop.f32.mrf.mxu1 }
 0x37b   :  { %1411 = vmatmul.mubr.msk.f32.gmra.mxu0 %vm85_vm0, %v697_v63 }
 0x37c   :  { %1413 = vmatprep.mubr.msk.f32.mxu0 %vm85_vm0, %v698_v4  ;;  %v888_v7 = vpop.f32.mrf.mxu1 }
 0x37e   :  { %v1395_v10 = vpop.f32.mrf.mxu1 }
 0x37f   :  { %1414 = vmatmul.mubr.msk.f32.gmra.mxu0 %vm85_vm0, %v699_v1 }
 0x380   :  { %v898_v14 = vpop.f32.mrf.mxu1 }
 0x382   :  { %v1398_v19 = vpop.f32.mrf.mxu1 }
 0x384   :  { %v908_v29 = vpop.f32.mrf.mxu1 }
 0x39e   :  { %v1375_v5 = vpop.f32.mrf.mxu0 }
 0x39f   :  { %v894_v12 = vadd.f32 %v1392_v6, %v1375_v5 }
 0x3a0   :  { %v793_v2 = vpop.f32.mrf.mxu0 }
 0x3a1   :  { %v889_v17 = vadd.f32 %v888_v7, %v793_v2 }
 0x3e9   :  { %v1378_v8 = vpop.f32.mrf.mxu0 }
 0x3ea   :  { %v904_v21 = vadd.f32 %v1395_v10, %v1378_v8 }
 0x3eb   :  { %v803_v9 = vpop.f32.mrf.mxu0 }
 0x3ec   :  { %v899_v25 = vadd.f32 %v898_v14, %v803_v9 }
 0x433   :  { %v1381_v11 = vpop.f32.mrf.mxu0 }
 0x434   :  { %v914_v31 = vadd.f32 %v1398_v19, %v1381_v11 }
 0x435   :  { %v813_v13 = vpop.f32.mrf.mxu0 }
 0x436   :  { %v909_v37 = vadd.f32 %v908_v29, %v813_v13 }
 0x437   :  { %v1409_v16 = vpop.f32.mrf.mxu0 }
 0x438   :  { %v1035_v18 = vadd.f32 %v1409_v16, %v894_v12 }
 0x439   :  { %v1005_v20 = vpop.f32.mrf.mxu0 }
 0x43a   :  { %v1047_v22 = vadd.f32 %v1282_v15, %v1035_v18  ;;  %v1034_v23 = vadd.f32 %v1005_v20, %v889_v17 }
 0x43b   :  { %v1412_v24 = vpop.f32.mrf.mxu0 }
 0x43c   :  { %v1059_v26 = vmul.f32 0.044715, %v1047_v22  ;;  %v1046_v27 = vadd.f32 %v1282_v15, %v1034_v23  ;;  %v1037_v28 = vadd.f32 %v1412_v24, %v904_v21  ;;  %v1053_v10 = vmul.f32 0.5, %v1047_v22 }
 0x43d   :  { %v1015_v30 = vpop.f32.mrf.mxu0 }
 0x43e   :  { %v1058_v32 = vmul.f32 0.044715, %v1046_v27  ;;  %v1049_v33 = vadd.f32 %v1282_v15, %v1037_v28  ;;  %v1036_v34 = vadd.f32 %v1015_v30, %v899_v25  ;;  %v1065_v36 = vmul.f32 %v1059_v26, %v1047_v22 }
 0x43f   :  { %v1415_v35 = vpop.f32.mrf.mxu0  ;;  %v1052_v12 = vmul.f32 0.5, %v1046_v27 }
 0x440   :  { %v1061_v38 = vmul.f32 0.044715, %v1049_v33  ;;  %v1048_v39 = vadd.f32 %v1282_v15, %v1036_v34  ;;  %v1039_v40 = vadd.f32 %v1415_v35, %v914_v31  ;;  %v1071_v42 = vmul.f32 %v1065_v36, %v1047_v22  ;;  %v1161_v36 = vpop.permute.xlu0 %1160 }
 0x441   :  { %v1025_v41 = vpop.f32.mrf.mxu0  ;;  %v1064_v43 = vmul.f32 %v1058_v32, %v1046_v27  ;;  %v1055_v20 = vmul.f32 0.5, %v1049_v33 }
 0x442   :  { %v1060_v44 = vmul.f32 0.044715, %v1048_v39  ;;  %v1051_v45 = vadd.f32 %v1282_v15, %v1039_v40  ;;  %v1038_v46 = vadd.f32 %v1025_v41, %v909_v37  ;;  %v1077_v47 = vadd.f32 %v1071_v42, %v1047_v22 }
 0x443   :  { %v1070_v48 = vmul.f32 %v1064_v43, %v1046_v27  ;;  %v1067_v49 = vmul.f32 %v1061_v38, %v1049_v33  ;;  %v1054_v28 = vmul.f32 0.5, %v1048_v39 }
 0x444   :  { %v1063_v50 = vmul.f32 0.044715, %v1051_v45  ;;  %v1050_v51 = vadd.f32 %v1282_v15, %v1038_v46  ;;  %v1066_v52 = vmul.f32 %v1060_v44, %v1048_v39  ;;  %v1083_v53 = vmul.f32 0.7978846, %v1077_v47  ;;  %v1165_v43 = vpop.permute.xlu0 %1164 }
 0x445   :  { %v1076_v54 = vadd.f32 %v1070_v48, %v1046_v27  ;;  %v1073_v55 = vmul.f32 %v1067_v49, %v1049_v33  ;;  %v1057_v31 = vmul.f32 0.5, %v1051_v45 }
 0x446   :  { %v1062_v56 = vmul.f32 0.044715, %v1050_v51  ;;  %v1072_v57 = vmul.f32 %v1066_v52, %v1048_v39  ;;  %v1069_v58 = vmul.f32 %v1063_v50, %v1051_v45  ;;  %1452 = vtanh.f32 %v1083_v53 }
 0x447   :  { %v1082_v59 = vmul.f32 0.7978846, %v1076_v54  ;;  %v1079_v60 = vadd.f32 %v1073_v55, %v1049_v33  ;;  %v1056_v26 = vmul.f32 0.5, %v1050_v51 }
 0x448   :  { %v1068_v61 = vmul.f32 %v1062_v56, %v1050_v51  ;;  %v1078_v62 = vadd.f32 %v1072_v57, %v1048_v39  ;;  %v1075_v63 = vmul.f32 %v1069_v58, %v1051_v45  ;;  %v1163_v39 = vpop.permute.xlu1 %1162 }
 0x449   :  { %1454 = vtanh.f32 %v1082_v59  ;;  %v1085_v4 = vmul.f32 0.7978846, %v1079_v60 }
 0x44a   :  { %v1074_v1 = vmul.f32 %v1068_v61, %v1050_v51  ;;  %v1084_v5 = vmul.f32 0.7978846, %v1078_v62  ;;  %v1081_v2 = vadd.f32 %v1075_v63, %v1051_v45 }
 0x44b   :  { %1456 = vtanh.f32 %v1085_v4 }
 0x44c   :  { %v1080_v6 = vadd.f32 %v1074_v1, %v1050_v51  ;;  %1458 = vtanh.f32 %v1084_v5  ;;  %v1087_v8 = vmul.f32 0.7978846, %v1081_v2 }
 0x44e   :  { %v1086_v7 = vmul.f32 0.7978846, %v1080_v6 }
 0x450   :  { %1460 = vtanh.f32 %v1086_v7 }
 0x451   :  { %1462 = vtanh.f32 %v1087_v8 }
 0x452   :  { %1464 = vtanh.f32 %v1053_v10 }
 0x453   :  { %v1453_v9 = vpop.eup %1452  ;;  %1466 = vtanh.f32 %v1052_v12 }
 0x454   :  { %v1095_v11 = vadd.f32 1.0, %v1453_v9  ;;  %1468 = vtanh.f32 %v1055_v20 }
 0x455   :  { %1470 = vtanh.f32 %v1054_v28 }
 0x456   :  { %v1455_v13 = vpop.eup %1454  ;;  %v1101_v14 = vmul.f32 %v1095_v11, %v1053_v10  ;;  %1472 = vtanh.f32 %v1056_v26 }
 0x457   :  { %v1094_v15 = vadd.f32 1.0, %v1455_v13  ;;  %1474 = vtanh.f32 %v1057_v31 }
 0x458   :  { %v1457_v16 = vpop.eup %1456  ;;  %1132 = vrot.lane.b32.xlu0 %v1101_v14, %s1524_s20 }
 0x459   :  { %v1100_v17 = vmul.f32 %v1094_v15, %v1052_v12  ;;  %v1097_v18 = vadd.f32 1.0, %v1457_v16  ;;  %v1459_v19 = vpop.eup %1458 }
 0x45a   :  { %v1096_v24 = vadd.f32 1.0, %v1459_v19 }
 0x45b   :  { %1130 = vrot.lane.b32.xlu1 %v1100_v17, %s1524_s20  ;;  %v1103_v23 = vmul.f32 %v1097_v18, %v1055_v20 }
 0x45c   :  { %v1102_v29 = vmul.f32 %v1096_v24, %v1054_v28 }
 0x45d   :  { %v1461_v21 = vpop.eup %1460 }
 0x45e   :  { %v1463_v25 = vpop.eup %1462  ;;  %v1098_v22 = vadd.f32 1.0, %v1461_v21 }
 0x45f   :  { %1136 = vrot.lane.b32.xlu1 %v1103_v23, %s1524_s20  ;;  %v1099_v30 = vadd.f32 1.0, %v1463_v25  ;;  %v1465_v33 = vpop.eup %1464 }
 0x460   :  { %v1104_v27 = vmul.f32 %v1098_v22, %v1056_v26  ;;  %v1467_v34 = vpop.eup %1466  ;;  %v1113_v35 = vadd.f32 1.0, %v1465_v33 }
 0x461   :  { %v1105_v32 = vmul.f32 %v1099_v30, %v1057_v31  ;;  %v1469_v37 = vpop.eup %1468  ;;  %v1112_v38 = vadd.f32 1.0, %v1467_v34 }
 0x462   :  { %1138 = vrot.lane.b32.xlu0 %v1104_v27, %s1524_s20  ;;  %v1119_v40 = vmul.f32 0.5, %v1113_v35  ;;  %v1471_v42 = vpop.eup %1470 }
 0x463   :  { %1134 = vrot.lane.b32.xlu1 %v1102_v29, %s1524_s20  ;;  %v1118_v41 = vmul.f32 0.5, %v1112_v38  ;;  %v1114_v47 = vadd.f32 1.0, %v1471_v42  ;;  %v1473_v49 = vpop.eup %1472 }
 0x464   :  { %v1155_v44 = vsub.f32 1.0, %v1119_v40  ;;  %v1116_v58 = vadd.f32 1.0, %v1473_v49  ;;  %v1475_v60 = vpop.eup %1474 }
 0x465   :  { %v1154_v46 = vsub.f32 1.0, %v1118_v41  ;;  %v1120_v55 = vmul.f32 0.5, %v1114_v47  ;;  %v1117_v6 = vadd.f32 1.0, %v1475_v60 }
 0x466   :  { %1168 = vrot.lane.b32.xlu0 %v1573_v0, %s1524_s20  ;;  %v1115_v0 = vadd.f32 1.0, %v1469_v37  ;;  %v1179_v50 = vmul.f32 %v1163_v39, %v1155_v44  ;;  %v1122_v1 = vmul.f32 0.5, %v1116_v58 }
 0x467   :  { %1140 = vrot.lane.b32.xlu1 %v1105_v32, %s1524_s20  ;;  %v1178_v54 = vmul.f32 %v1161_v36, %v1154_v46  ;;  %v1156_v63 = vsub.f32 1.0, %v1120_v55  ;;  %v1123_v13 = vmul.f32 0.5, %v1117_v6 }
 0x468   :  { %v1121_v45 = vmul.f32 0.5, %v1115_v0  ;;  %v1158_v10 = vsub.f32 1.0, %v1122_v1 }
 0x469   :  { %v1180_v7 = vmul.f32 %v1165_v43, %v1156_v63  ;;  %v1159_v18 = vsub.f32 1.0, %v1123_v13 }
 0x46a   :  { %v1157_v52 = vsub.f32 1.0, %v1121_v45 }
 0x46b   :  { %1170 = vrot.lane.b32.xlu1 %v1592_v3, %s1524_s20  ;;  %v1167_v3 = vpop.permute.xlu1 %1166 }
 0x46c   :  { %v1181_v62 = vmul.f32 %v1167_v3, %v1157_v52 }
 0x4ca   :  { %v1133_v48 = vpop.permute.xlu0 %1132 }
 0x4cb   :  { %v1149_v51 = vmul.f32 %v1133_v48, %v1119_v40 }
 0x4cd   :  { %v1131_v53 = vpop.permute.xlu1 %1130  ;;  %v1185_v56 = vadd.f32 %v1179_v50, %v1149_v51 }
 0x4ce   :  { %v1148_v57 = vmul.f32 %v1131_v53, %v1118_v41 }
 0x4cf   :  { %1196 = vrot.lane.b32.xlu1 %v1185_v56, %s1525_s5 }
 0x4d0   :  { %v1184_v59 = vadd.f32 %v1178_v54, %v1148_v57 }
 0x4d1   :  { %v1137_v61 = vpop.permute.xlu1 %1136 }
 0x4d2   :  { %v1151_v4 = vmul.f32 %v1137_v61, %v1121_v45  ;;  %1194 = vrot.lane.b32.xlu0 %v1184_v59, %s1525_s5 }
 0x4d4   :  { %v1187_v5 = vadd.f32 %v1181_v62, %v1151_v4  ;;  %v1139_v2 = vpop.permute.xlu0 %1138 }
 0x4d5   :  { %v1135_v8 = vpop.permute.xlu1 %1134  ;;  %v1152_v14 = vmul.f32 %v1139_v2, %v1122_v1 }
 0x4d6   :  { %v1150_v9 = vmul.f32 %v1135_v8, %v1120_v55  ;;  %1200 = vrot.lane.b32.xlu1 %v1187_v5, %s1525_s5 }
 0x4d8   :  { %v1186_v11 = vadd.f32 %v1180_v7, %v1150_v9  ;;  %v1169_v12 = vpop.permute.xlu0 %1168 }
 0x4d9   :  { %v1141_v15 = vpop.permute.xlu1 %1140  ;;  %v1182_v16 = vmul.f32 %v1169_v12, %v1158_v10 }
 0x4da   :  { %1198 = vrot.lane.b32.xlu0 %v1186_v11, %s1525_s5  ;;  %v1153_v20 = vmul.f32 %v1141_v15, %v1123_v13 }
 0x4db   :  { %v1188_v17 = vadd.f32 %v1182_v16, %v1152_v14 }
 0x4dd   :  { %v1171_v19 = vpop.permute.xlu1 %1170 }
 0x4de   :  { %v1183_v21 = vmul.f32 %v1171_v19, %v1159_v18  ;;  %1212 = vrot.lane.b32.xlu0 %v1188_v17, %s1525_s5 }
 0x4e0   :  { %v1189_v23 = vadd.f32 %v1183_v21, %v1153_v20 }
 0x4e2   :  { %1214 = vrot.lane.b32.xlu1 %v1189_v23, %s1525_s5 }
 0x541   :  { %v1197_v24 = vpop.permute.xlu1 %1196 }
 0x542   :  { %1207 = vst.msk [vmem:[#allocation2 + $0x8] sm:$0xff] %vm85_vm0, %v1197_v24 }
 0x544   :  { %v1195_v25 = vpop.permute.xlu0 %1194 }
 0x545   :  { %1206 = vst.msk [vmem:[#allocation2] sm:$0xff] %vm85_vm0, %v1195_v25 }
 0x548   :  { %v1201_v26 = vpop.permute.xlu1 %1200 }
 0x549   :  { %1209 = vst.msk [vmem:[#allocation2 + $0x18] sm:$0xff] %vm85_vm0, %v1201_v26 }
 0x54c   :  { %v1199_v22 = vpop.permute.xlu0 %1198 }
 0x54d   :  { %1208 = vst.msk [vmem:[#allocation2 + $0x10] sm:$0xff] %vm85_vm0, %v1199_v22 }
 0x54e   :  { %1487 = shalt.err (!%p1484_p4)
}
 0x54f   :  { %s1527_s23 = smov 128   ;;  %s1528_s24 = smov 8  }
 0x550   :  { %1231 = dma.vmem_to_hbm [thread:$0]  %s1226_s3, 512, %s1773_s6, [#allocation3], %s1527_s23, %s1527_s23, %s1528_s24   ;;  %v1213_v28 = vpop.permute.xlu0 %1212 }
 0x551   :  { %s1529_s27 = smov [#allocation4]   ;;  %1218 = vst.msk [vmem:[#allocation4] sm:$0xff] %vm85_vm0, %v1213_v28 }
 0x552   :  { %s1237_s28 = sshll.u32 %s1529_s27, 4  ;;  %s1238_s28 = int_to_ptr.vmem [resolvable:$true] %s1237_s28 }
 0x553   :  { %s1496_s29 = scalar_lea.vmem %s1238_s28, 256  ;;  %p1501_p6 = scmp.lt.s32.totalorder %s1238_s28, %s1238_s28 }
 0x554   :  { %v1215_v27 = vpop.permute.xlu1 %1214  ;;  %p1497_p5 = scmp.ne.s32.totalorder %s1238_s28, %s1496_s29  ;;  %p1502_p7 = scmp.lt.s32.totalorder %s1496_s29, %s1496_s29 }
 0x555   :  { %1219 = vst.msk [vmem:[#allocation4 + $0x8] sm:$0xff] %vm85_vm0, %v1215_v27 }
 0x556   :  { %p1503_p8 = por %p1502_p7, %p1501_p6 }
 0x558   :  { %p1504_p9 = pnand %p1503_p8, %p1497_p5 }
 0x55a   :  { %1507 = shalt.err (!%p1504_p9)
}
 0x55b   :  { %1243 = dma.vmem_to_hbm [thread:$0]  %s1238_s28, 256, %s1774_s7, [#allocation5], %s1527_s23, %s1527_s23, %s1528_s24  }
 0x55c   :  { %1516 = dma.done.wait [#allocation3], 512  }
 0x55d   :  { %1517 = vsyncadd [#allocation3], 4294966784 }
 0x55e   :  { %1518 = dma.done.wait [#allocation5], 256  }
 0x55f   :  { %1519 = vsyncadd [#allocation5], 4294967040 }
 0x560   :  { %1250 = vsyncpa [#allocation3], 1 }
 0x561   :  { %1251 = vsyncpa [#allocation5], 1 }

// kernel: tpu_custom_call.1
= control target key start
LH: loop header
LB: loop body
LE: loop exit
PB: predicated region body
PF: predicated region fallthrough
CT: control target
= control target key end

     0   :  { %13 = vsyncpa [#allocation3], 0  ;;  %vm85_vm0 = vcmask 261120   ;;  %v1520_v4 = vmov 0   ;;  %s1767_s0 = inlined_call_operand.vmem [shape: f32[2,16,32], index: 0, kind: input, shape index: {}]   ;;  %s1768_s1 = inlined_call_operand.vmem [shape: f32[2,8,32], index: 1, kind: input, shape index: {}]   ;;  %s1769_s2 = inlined_call_operand.vmem [shape: f32[2,16,1], index: 2, kind: input, shape index: {}]   ;;  %s1770_s3 = inlined_call_operand.vmem [shape: f32[2,1,8], index: 3, kind: input, shape index: {}]   ;;  %s1771_s4 = inlined_call_operand.vmem [shape: f32[96,64], index: 4, kind: input, shape index: {}]   ;;  %s1772_s5 = inlined_call_operand.vmem [shape: f32[1,64], index: 5, kind: input, shape index: {}]   ;;  %s1773_s6 = inlined_call_operand.hbm [shape: f32[2,16,32], index: 6, kind: output, shape index: {0}]   ;;  %s1774_s7 = inlined_call_operand.hbm [shape: f32[2,8,32], index: 7, kind: output, shape index: {1}]  }
   0x1   :  { %v1573_v0 = vld [vmem:[%s1768_s1] sm:$0xff]  ;;  %v1587_v2 = vld [vmem:[%s1767_s0 + $0x8] sm:$0xff]  ;;  %1427 = vset.pattern.permute.xlu1 %v1520_v4  ;;  %v36_v6 = vld [vmem:[%s1769_s2 + $0x18] sm:$0xff]  ;;  %1426 = vset.pattern.permute.xlu0 %v1520_v4 }
   0x2   :  { %v1578_v1 = vld [vmem:[%s1767_s0] sm:$0xff]  ;;  %1331 = vmatprep.subr.msk.mxu1 %vm85_vm0, %v1573_v0  ;;  %v1592_v3 = vld [vmem:[%s1768_s1 + $0x8] sm:$0xff]  ;;  %v1610_v8 = vld [vmem:[%s1767_s0 + $0x10] sm:$0xff]  ;;  %vm42_vm2 = vcmp.gt.f32.partialorder %v36_v6, 0.0  ;;  %1341 = vmatprep.subr.mxu0 %v1573_v0 }
   0x3   :  { %1333 = vmatprep.mubr.msk.f32.mxu1 %vm85_vm0, %v1578_v1  ;;  %1332 = vmatpush3.xpose.msk.msra.mxu1 %vm85_vm0, %v1573_v0  ;;  %v34_v5 = vld [vmem:[%s1769_s2 + $0x8] sm:$0xff]  ;;  %v33_v7 = vld [vmem:[%s1769_s2] sm:$0xff]  ;;  %v35_v9 = vld [vmem:[%s1769_s2 + $0x10] sm:$0xff] }
   0x4   :  { %1336 = vmatprep.subr.msk.mxu1 %vm85_vm0, %v1592_v3  ;;  %vm40_vm1 = vcmp.gt.f32.partialorder %v34_v5, 0.0  ;;  %vm39_vm3 = vcmp.gt.f32.partialorder %v33_v7, 0.0  ;;  %vm41_vm4 = vcmp.gt.f32.partialorder %v35_v9, 0.0 }
   0x5   :  { %v46_v10 = vsel %vm40_vm1, 1, %v1520_v4  ;;  %v45_v11 = vsel %vm39_vm3, 1, %v1520_v4 }
   0x6   :  { %1334 = vmatmul.mubr.msk.f32.vlgmr.msra.gmra.mxu1 %vm85_vm0, %v1587_v2  ;;  %53 = vperm.xlu1 %1427, %v46_v10  }
   0x7   :  { %14 = vsyncpa [#allocation5], 0  ;;  %1337 = vmatpush3.xpose.msk.msra.mxu1 %vm85_vm0, %v1592_v3  ;;  %1338 = vmatprep.mubr.msk.f32.mxu1 %vm85_vm0, %v1610_v8  ;;  %v1625_v12 = vld [vmem:[%s1767_s0 + $0x18] sm:$0xff]  ;;  %v48_v13 = vsel %vm42_vm2, 1, %v1520_v4  ;;  %v47_v14 = vsel %vm41_vm4, 1, %v1520_v4  ;;  %v67_v15 = vlaneseq  ;;  %vm318_vm11 = vcmask 64512  }
   0x8   :  { %50 = vperm.xlu0 %1426, %v45_v11   ;;  %1342 = vmatpush3.msra.mxu0 %v1573_v0  ;;  %v37_v16 = vld [vmem:[%s1770_s3] sm:$0x1]  ;;  %v1521_v23 = vmov -1e+29   ;;  %v38_v32 = vld [vmem:[%s1770_s3 + $0x1] sm:$0x1] }
   0x9   :  { %1346 = vmatprep.subr.mxu1 %v1592_v3  ;;  %v68_v17 = vshrl.u32 %v67_v15, 7  ;;  %vm43_vm5 = vcmp.gt.f32.partialorder %v37_v16, 0.0  ;;  %vm44_vm12 = vcmp.gt.f32.partialorder %v38_v32, 0.0  ;;  %vm363_vm3 = vcmask 130048   ;;  %s1524_s20 = smov 32   ;;  %s1526_s21 = smov [#allocation2]  }
   0xa   :  { %1339 = vmatmul.mubr.msk.f32.vlgmr.msra.gmra.mxu1 %vm85_vm0, %v1625_v12  ;;  %59 = vperm.xlu1 %1427, %v48_v13   ;;  %v65_v19 = vsel %vm43_vm5, 1, %v1520_v4  ;;  %v66_v33 = vsel %vm44_vm12, 1, %v1520_v4  ;;  %vm1523_vm4 = vmmov 0   ;;  %s1225_s3 = sshll.u32 %s1526_s21, 4  ;;  %s1226_s3 = int_to_ptr.vmem [resolvable:$true] %s1225_s3 }
   0xb   :  { %1347 = vmatpush3.msra.mxu1 %v1592_v3  ;;  %v69_v18 = vsub.s32 0, %v68_v17  ;;  %s1476_s22 = scalar_lea.vmem %s1226_s3, 512  ;;  %p1481_p1 = scmp.lt.s32.totalorder %s1226_s3, %s1226_s3 }
   0xc   :  { %56 = vperm.xlu0 %1426, %v47_v14   ;;  %p1477_p0 = scmp.ne.s32.totalorder %s1226_s3, %s1476_s22  ;;  %p1482_p2 = scmp.lt.s32.totalorder %s1476_s22, %s1476_s22 }
   0xd   :  { %v70_v20 = vrot.slane %v65_v19, %v69_v18  ;;  %v74_v35 = vrot.slane %v66_v33, %v69_v18 }
   0xe   :  { %p1483_p3 = por %p1482_p2, %p1481_p1 }
   0xf   :  { %vm75_vm6 = vcmp.eq.s32.totalorder %v70_v20, 1  ;;  %vm76_vm14 = vcmp.eq.s32.totalorder %v74_v35, 1  ;;  %v704_v35 = vld [vmem:[%s1771_s4 + $0x18] sm:$0xff] }
  0x10   :  { %p1484_p4 = pnand %p1483_p3, %p1477_p0 }
  0x81   :  { %v54_v21 = vpop.permute.xlu1 %53 }
  0x82   :  { %vm62_vm7 = vcmp.eq.s32.totalorder %v54_v21, 1 }
  0x83   :  { %v51_v22 = vpop.permute.xlu0 %50  ;;  %vm78_vm9 = vmand %vm62_vm7, %vm75_vm6 }
  0x84   :  { %vm61_vm8 = vcmp.eq.s32.totalorder %v51_v22, 1  ;;  %v82_v24 = vsel %vm78_vm9, 0.0, %v1521_v23 }
  0x85   :  { %vm77_vm10 = vmand %vm61_vm8, %vm75_vm6  ;;  %v60_v37 = vpop.permute.xlu1 %59 }
  0x86   :  { %v81_v26 = vsel %vm77_vm10, 0.0, %v1521_v23  ;;  %vm64_vm1 = vcmp.eq.s32.totalorder %v60_v37, 1 }
  0x87   :  { %v57_v34 = vpop.permute.xlu0 %56  ;;  %vm80_vm2 = vmand %vm64_vm1, %vm76_vm14 }
  0x88   :  { %vm63_vm13 = vcmp.eq.s32.totalorder %v57_v34, 1  ;;  %v84_v41 = vsel %vm80_vm2, 0.0, %v1521_v23 }
  0x89   :  { %vm79_vm15 = vmand %vm63_vm13, %vm76_vm14 }
  0x8a   :  { %v83_v38 = vsel %vm79_vm15, 0.0, %v1521_v23 }
  0xc6   :  { %v1335_v25 = vpop.f32.mrf.mxu1 }
  0xc7   :  { %v167_v27 = vadd.f32 %v1335_v25, %v82_v24 }
  0xc8   :  { %v161_v28 = vpop.f32.mrf.mxu1 }
  0xc9   :  { %v162_v29 = vadd.f32 %v161_v28, %v81_v26  ;;  %v322_v30 = vsel %vm318_vm11, %v167_v27, -inf  ;;  %v708_v28 = vld [vmem:[%s1771_s4 + $0x38] sm:$0xff] }
  0xca   :  { %323 = vmax.xlane.f32.xlu1 %v322_v30  ;;  %v1340_v36 = vpop.f32.mrf.mxu1 }
  0xcb   :  { %v319_v31 = vsel %vm318_vm11, %v162_v29, -inf  ;;  %v251_v42 = vadd.f32 %v1340_v36, %v84_v41 }
  0xcc   :  { %320 = vmax.xlane.f32.xlu0 %v319_v31  ;;  %v245_v39 = vpop.f32.mrf.mxu1 }
  0xcd   :  { %v246_v40 = vadd.f32 %v245_v39, %v83_v38  ;;  %v328_v44 = vsel %vm318_vm11, %v251_v42, -inf }
  0xcf   :  { %v325_v43 = vsel %vm318_vm11, %v246_v40, -inf }
  0xf9   :  { %254 = vxpose.xlu0.b32.start [1/2] (short) (narrow) %v162_v29, 8 }
  0xfd   :  { %286 = vxpose.xlu1.b32.start [1/2] (short) (narrow) %v246_v40, 8  ;;  %255 = vxpose.xlu0.b32.end [2/2] (short) (narrow) %v167_v27, 8 }
 0x101   :  { %287 = vxpose.xlu1.b32.end [2/2] (short) (narrow) %v251_v42, 8 }
 0x12a   :  { %326 = vmax.xlane.f32.xlu0 %v325_v43 }
 0x12e   :  { %329 = vmax.xlane.f32.xlu0 %v328_v44  ;;  %v703_v44 = vld [vmem:[%s1771_s4 + $0x10] sm:$0xff] }
 0x153   :  { %v324_v47 = vpop.xlane.xlu1 %323 }
 0x154   :  { %v332_v48 = vsub.f32 %v167_v27, %v324_v47  ;;  %v1522_v27 = vmov 0.0   ;;  %v920_v47 = vld [vmem:[%s1771_s4 + $0x58] sm:$0xff] }
 0x155   :  { %v321_v45 = vpop.xlane.xlu0 %320  ;;  %1351 = vmatprep.subr.mxu0 %v1522_v27  ;;  %1358 = vmatprep.subr.mxu1 %v1522_v27 }
 0x156   :  { %v331_v46 = vsub.f32 %v162_v29, %v321_v45  ;;  %v337_v50 = vmul.f32 1.442695, %v332_v48  ;;  %v705_v45 = vld [vmem:[%s1771_s4 + $0x20] sm:$0xff] }
 0x157   :  { %v701_v48 = vld [vmem:[%s1771_s4] sm:$0xff] }
 0x158   :  { %v335_v49 = vmul.f32 1.442695, %v331_v46  ;;  %v702_v46 = vld [vmem:[%s1771_s4 + $0x8] sm:$0xff] }
 0x15a   :  { %1428 = vpow2.f32 %v335_v49 }
 0x15b   :  { %1430 = vpow2.f32 %v337_v50 }
 0x167   :  { %v1429_v53 = vpop.eup %1428 }
 0x168   :  { %v343_v56 = vsel %vm318_vm11, %v1429_v53, 0.0  ;;  %v1431_v57 = vpop.eup %1430 }
 0x169   :  { %v346_v58 = vsel %vm318_vm11, %v1431_v57, 0.0 }
 0x175   :  { %v270_v51 = vpop.trf.xlu0 }
 0x176   :  { %v364_v52 = vsel %vm363_vm3, %v270_v51, -inf }
 0x177   :  { %365 = vmax.xlane.f32.xlu1 %v364_v52  ;;  %v918_v52 = vld [vmem:[%s1771_s4 + $0x48] sm:$0xff] }
 0x179   :  { %v302_v54 = vpop.trf.xlu1 }
 0x17a   :  { %v367_v55 = vsel %vm363_vm3, %v302_v54, -inf }
 0x17b   :  { %368 = vmax.xlane.f32.xlu0 %v367_v55  ;;  %344 = vadd.xlane.f32.xlu1 %v343_v56 }
 0x17f   :  { %347 = vadd.xlane.f32.xlu0 %v346_v58 }
 0x1b3   :  { %v327_v59 = vpop.xlane.xlu0 %326 }
 0x1b4   :  { %v333_v60 = vsub.f32 %v246_v40, %v327_v59  ;;  %v707_v40 = vld [vmem:[%s1771_s4 + $0x30] sm:$0xff] }
 0x1b6   :  { %v339_v61 = vmul.f32 1.442695, %v333_v60 }
 0x1b7   :  { %v330_v62 = vpop.xlane.xlu0 %329 }
 0x1b8   :  { %1432 = vpow2.f32 %v339_v61  ;;  %v334_v63 = vsub.f32 %v251_v42, %v330_v62  ;;  %v706_v42 = vld [vmem:[%s1771_s4 + $0x28] sm:$0xff] }
 0x1ba   :  { %v341_v4 = vmul.f32 1.442695, %v334_v63 }
 0x1bc   :  { %1434 = vpow2.f32 %v341_v4 }
 0x1c5   :  { %v1433_v5 = vpop.eup %1432 }
 0x1c6   :  { %v349_v6 = vsel %vm318_vm11, %v1433_v5, 0.0 }
 0x1c7   :  { %350 = vadd.xlane.f32.xlu1 %v349_v6 }
 0x1c9   :  { %v1435_v7 = vpop.eup %1434 }
 0x1ca   :  { %v352_v9 = vsel %vm318_vm11, %v1435_v7, 0.0 }
 0x1cb   :  { %353 = vadd.xlane.f32.xlu0 %v352_v9 }
 0x200   :  { %v366_v10 = vpop.xlane.xlu1 %365 }
 0x201   :  { %v370_v11 = vsub.f32 %v270_v51, %v366_v10  ;;  %v919_v51 = vld [vmem:[%s1771_s4 + $0x50] sm:$0xff] }
 0x203   :  { %v372_v13 = vmul.f32 1.442695, %v370_v11 }
 0x204   :  { %v345_v14 = vpop.xlane.xlu1 %344  ;;  %v369_v15 = vpop.xlane.xlu0 %368 }
 0x205   :  { %1436 = vpow2.f32 %v372_v13  ;;  %v371_v16 = vsub.f32 %v302_v54, %v369_v15  ;;  %v1282_v15 = vld [vmem:[%s1772_s5] ss:$0 sm:$0xff]  ;;  %s1525_s5 = smov 96  }
 0x206   :  { %1438 = vrcp.f32 %v345_v14 }
 0x207   :  { %v374_v17 = vmul.f32 1.442695, %v371_v16 }
 0x208   :  { %v348_v18 = vpop.xlane.xlu0 %347 }
 0x209   :  { %1440 = vpow2.f32 %v374_v17 }
 0x20a   :  { %1442 = vrcp.f32 %v348_v18 }
 0x212   :  { %v1437_v19 = vpop.eup %1436 }
 0x213   :  { %v1439_v20 = vpop.eup %1438  ;;  %v376_v21 = vsel %vm363_vm3, %v1437_v19, 0.0 }
 0x214   :  { %377 = vadd.xlane.f32.xlu1 %v376_v21  ;;  %v359_v22 = vmul.f32 %v1439_v20, %v1429_v53  ;;  %v917_v53 = vld [vmem:[%s1771_s4 + $0x40] sm:$0xff] }
 0x216   :  { %v1441_v23 = vpop.eup %1440  ;;  %1343 = vmatprep.mubr.msk.f32.mxu0 %vm318_vm11, %v359_v22 }
 0x217   :  { %v1443_v24 = vpop.eup %1442  ;;  %v379_v25 = vsel %vm363_vm3, %v1441_v23, 0.0 }
 0x218   :  { %380 = vadd.xlane.f32.xlu0 %v379_v25  ;;  %v360_v26 = vmul.f32 %v1443_v24, %v1431_v57 }
 0x21a   :  { %1344 = vmatmul.mubr.msk.f32.vlgmr.msra.gmra.mxu0 %vm318_vm11, %v360_v26 }
 0x21b   :  { %1355 = vmatprep.mubr.msk.f32.mxu0 %vm1523_vm4, %v1522_v27  ;;  %1352 = vmatpush3.msra.mxu0 %v1587_v2 }
 0x21c   :  { %1353 = vmatprep.subr.mxu0 %v1522_v27 }
 0x21d   :  { %1354 = vmatpush3.msra.mxu0 %v1578_v1 }
 0x21e   :  { %1365 = vmatprep.subr.mxu0 %v708_v28 }
 0x225   :  { %1162 = vrot.lane.b32.xlu1 %v1587_v2, %s1524_s20 }
 0x229   :  { %1166 = vrot.lane.b32.xlu1 %v1625_v12, %s1524_s20 }
 0x22e   :  { %1160 = vrot.lane.b32.xlu0 %v1578_v1, %s1524_s20 }
 0x232   :  { %1164 = vrot.lane.b32.xlu0 %v1610_v8, %s1524_s20 }
 0x250   :  { %v351_v29 = vpop.xlane.xlu1 %350 }
 0x251   :  { %1444 = vrcp.f32 %v351_v29 }
 0x254   :  { %v354_v30 = vpop.xlane.xlu0 %353 }
 0x255   :  { %1446 = vrcp.f32 %v354_v30 }
 0x25e   :  { %v1445_v31 = vpop.eup %1444 }
 0x25f   :  { %v361_v32 = vmul.f32 %v1445_v31, %v1433_v5 }
 0x261   :  { %1348 = vmatprep.mubr.msk.f32.mxu1 %vm318_vm11, %v361_v32 }
 0x262   :  { %v1447_v33 = vpop.eup %1446 }
 0x263   :  { %v362_v34 = vmul.f32 %v1447_v33, %v1435_v7 }
 0x265   :  { %1349 = vmatmul.mubr.msk.f32.vlgmr.msra.gmra.mxu1 %vm318_vm11, %v362_v34 }
 0x266   :  { %1359 = vmatpush3.msra.mxu1 %v1625_v12  ;;  %1362 = vmatprep.mubr.msk.f32.mxu1 %vm1523_vm4, %v1522_v27 }
 0x267   :  { %1360 = vmatprep.subr.mxu1 %v1522_v27 }
 0x268   :  { %1361 = vmatpush3.msra.mxu1 %v1610_v8 }
 0x269   :  { %1382 = vmatprep.subr.mxu1 %v704_v35 }
 0x29d   :  { %v378_v36 = vpop.xlane.xlu1 %377 }
 0x29e   :  { %1448 = vrcp.f32 %v378_v36 }
 0x2a1   :  { %v381_v37 = vpop.xlane.xlu0 %380 }
 0x2a2   :  { %1450 = vrcp.f32 %v381_v37 }
 0x2ab   :  { %v1449_v38 = vpop.eup %1448 }
 0x2ac   :  { %v384_v39 = vmul.f32 %v1449_v38, %v1437_v19 }
 0x2ae   :  { %1356 = vmatmul.mubr.msk.f32.vlgmr.msra.gmra.mxu0 %vm363_vm3, %v384_v39 }
 0x2af   :  { %v1451_v41 = vpop.eup %1450  ;;  %1366 = vmatpush3.msra.mxu0 %v708_v28 }
 0x2b0   :  { %v385_v43 = vmul.f32 %v1451_v41, %v1441_v23  ;;  %1367 = vmatprep.subr.mxu0 %v707_v40 }
 0x2b1   :  { %1368 = vmatpush3.msra.mxu0 %v707_v40 }
 0x2b2   :  { %1363 = vmatmul.mubr.msk.f32.vlgmr.msra.gmra.mxu1 %vm363_vm3, %v385_v43  ;;  %1369 = vmatprep.subr.mxu0 %v706_v42 }
 0x2b3   :  { %1383 = vmatpush3.msra.mxu1 %v704_v35  ;;  %1370 = vmatpush3.msra.mxu0 %v706_v42 }
 0x2b4   :  { %1384 = vmatprep.subr.mxu1 %v703_v44  ;;  %1371 = vmatprep.subr.mxu0 %v705_v45 }
 0x2b5   :  { %1385 = vmatpush3.msra.mxu1 %v703_v44  ;;  %1372 = vmatpush3.msra.mxu0 %v705_v45 }
 0x2b6   :  { %1386 = vmatprep.subr.mxu1 %v702_v46  ;;  %1390 = vmatprep.mubr.msk.f32.mxu1 %vm85_vm0, %v1578_v1 }
 0x2b7   :  { %1387 = vmatpush3.msra.mxu1 %v702_v46  ;;  %1399 = vmatprep.subr.mxu0 %v920_v47 }
 0x2b8   :  { %1388 = vmatprep.subr.mxu1 %v701_v48 }
 0x2b9   :  { %1389 = vmatpush3.msra.mxu1 %v701_v48 }
 0x2ba   :  { %1391 = vmatmul.mubr.msk.f32.vlgmr.msra.gmra.mxu1 %vm85_vm0, %v1587_v2 }
 0x2bb   :  { %1393 = vmatprep.mubr.msk.f32.mxu1 %vm85_vm0, %v1610_v8 }
 0x2be   :  { %1394 = vmatmul.mubr.msk.f32.gmra.mxu1 %vm85_vm0, %v1625_v12 }
 0x2bf   :  { %1396 = vmatprep.mubr.msk.f32.mxu1 %vm85_vm0, %v1573_v0 }
 0x2c2   :  { %1397 = vmatmul.mubr.msk.f32.gmra.mxu1 %vm85_vm0, %v1592_v3 }
 0x2da   :  { %v1345_v49 = vpop.f32.mrf.mxu0 }
 0x2db   :  { %v695_v61 = vmul.f32 %v1345_v49, %v1587_v2 }
 0x2dc   :  { %v458_v50 = vpop.f32.mrf.mxu0 }
 0x2dd   :  { %1373 = vmatprep.mubr.msk.f32.mxu0 %vm85_vm0, %v458_v50  ;;  %v694_v58 = vmul.f32 %v458_v50, %v1578_v1 }
 0x2de   :  { %1374 = vmatmul.mubr.msk.f32.vlgmr.msra.gmra.mxu0 %vm85_vm0, %v1345_v49 }
 0x2df   :  { %1400 = vmatpush3.msra.mxu0 %v920_v47 }
 0x2e0   :  { %1401 = vmatprep.subr.mxu0 %v919_v51 }
 0x2e1   :  { %1402 = vmatpush3.msra.mxu0 %v919_v51 }
 0x2e2   :  { %1403 = vmatprep.subr.mxu0 %v918_v52 }
 0x2e3   :  { %1404 = vmatpush3.msra.mxu0 %v918_v52 }
 0x2e4   :  { %1405 = vmatprep.subr.mxu0 %v917_v53 }
 0x2e5   :  { %1406 = vmatpush3.msra.mxu0 %v917_v53 }
 0x325   :  { %v1350_v54 = vpop.f32.mrf.mxu1 }
 0x326   :  { %v697_v63 = vmul.f32 %v1350_v54, %v1625_v12 }
 0x327   :  { %v539_v55 = vpop.f32.mrf.mxu1 }
 0x328   :  { %1376 = vmatprep.mubr.msk.f32.mxu0 %vm85_vm0, %v539_v55  ;;  %v696_v62 = vmul.f32 %v539_v55, %v1610_v8 }
 0x329   :  { %1377 = vmatmul.mubr.msk.f32.gmra.mxu0 %vm85_vm0, %v1350_v54 }
 0x36e   :  { %v617_v56 = vpop.f32.mrf.mxu0 }
 0x36f   :  { %1379 = vmatprep.mubr.msk.f32.mxu0 %vm85_vm0, %v617_v56  ;;  %v698_v4 = vmul.f32 %v617_v56, %v1573_v0 }
 0x370   :  { %v1357_v57 = vpop.f32.mrf.mxu0 }
 0x372   :  { %v690_v59 = vpop.f32.mrf.mxu1 }
 0x373   :  { %1380 = vmatmul.mubr.msk.f32.gmra.mxu0 %vm85_vm0, %v690_v59  ;;  %v699_v1 = vmul.f32 %v690_v59, %v1592_v3 }
 0x374   :  { %v1364_v60 = vpop.f32.mrf.mxu1  ;;  %1407 = vmatprep.mubr.msk.f32.mxu0 %vm85_vm0, %v694_v58 }
 0x377   :  { %1408 = vmatmul.mubr.msk.f32.vlgmr.msra.gmra.mxu0 %vm85_vm0, %v695_v61 }
 0x378   :  { %1410 = vmatprep.mubr.msk.f32.mxu0 %vm85_vm0, %v696_v62 }
 0x37a   :  { %v1392_v6 = vpop.f32.mrf.mxu1 }
 0x37b   :  { %1411 = vmatmul.mubr.msk.f32.gmra.mxu0 %vm85_vm0, %v697_v63 }
 0x37c   :  { %1413 = vmatprep.mubr.msk.f32.mxu0 %vm85_vm0, %v698_v4  ;;  %v888_v7 = vpop.f32.mrf.mxu1 }
 0x37e   :  { %v1395_v10 = vpop.f32.mrf.mxu1 }
 0x37f   :  { %1414 = vmatmul.mubr.msk.f32.gmra.mxu0 %vm85_vm0, %v699_v1 }
 0x380   :  { %v898_v14 = vpop.f32.mrf.mxu1 }
 0x382   :  { %v1398_v19 = vpop.f32.mrf.mxu1 }
 0x384   :  { %v908_v29 = vpop.f32.mrf.mxu1 }
 0x39e   :  { %v1375_v5 = vpop.f32.mrf.mxu0 }
 0x39f   :  { %v894_v12 = vadd.f32 %v1392_v6, %v1375_v5 }
 0x3a0   :  { %v793_v2 = vpop.f32.mrf.mxu0 }
 0x3a1   :  { %v889_v17 = vadd.f32 %v888_v7, %v793_v2 }
 0x3e9   :  { %v1378_v8 = vpop.f32.mrf.mxu0 }
 0x3ea   :  { %v904_v21 = vadd.f32 %v1395_v10, %v1378_v8 }
 0x3eb   :  { %v803_v9 = vpop.f32.mrf.mxu0 }
 0x3ec   :  { %v899_v25 = vadd.f32 %v898_v14, %v803_v9 }
 0x433   :  { %v1381_v11 = vpop.f32.mrf.mxu0 }
 0x434   :  { %v914_v31 = vadd.f32 %v1398_v19, %v1381_v11 }
 0x435   :  { %v813_v13 = vpop.f32.mrf.mxu0 }
 0x436   :  { %v909_v37 = vadd.f32 %v908_v29, %v813_v13 }
 0x437   :  { %v1409_v16 = vpop.f32.mrf.mxu0 }
 0x438   :  { %v1035_v18 = vadd.f32 %v1409_v16, %v894_v12 }
 0x439   :  { %v1005_v20 = vpop.f32.mrf.mxu0 }
 0x43a   :  { %v1047_v22 = vadd.f32 %v1282_v15, %v1035_v18  ;;  %v1034_v23 = vadd.f32 %v1005_v20, %v889_v17 }
 0x43b   :  { %v1412_v24 = vpop.f32.mrf.mxu0 }
 0x43c   :  { %v1059_v26 = vmul.f32 0.044715, %v1047_v22  ;;  %v1046_v27 = vadd.f32 %v1282_v15, %v1034_v23  ;;  %v1037_v28 = vadd.f32 %v1412_v24, %v904_v21  ;;  %v1053_v10 = vmul.f32 0.5, %v1047_v22 }
 0x43d   :  { %v1015_v30 = vpop.f32.mrf.mxu0 }
 0x43e   :  { %v1058_v32 = vmul.f32 0.044715, %v1046_v27  ;;  %v1049_v33 = vadd.f32 %v1282_v15, %v1037_v28  ;;  %v1036_v34 = vadd.f32 %v1015_v30, %v899_v25  ;;  %v1065_v36 = vmul.f32 %v1059_v26, %v1047_v22 }
 0x43f   :  { %v1415_v35 = vpop.f32.mrf.mxu0  ;;  %v1052_v12 = vmul.f32 0.5, %v1046_v27 }
 0x440   :  { %v1061_v38 = vmul.f32 0.044715, %v1049_v33  ;;  %v1048_v39 = vadd.f32 %v1282_v15, %v1036_v34  ;;  %v1039_v40 = vadd.f32 %v1415_v35, %v914_v31  ;;  %v1071_v42 = vmul.f32 %v1065_v36, %v1047_v22  ;;  %v1161_v36 = vpop.permute.xlu0 %1160 }
 0x441   :  { %v1025_v41 = vpop.f32.mrf.mxu0  ;;  %v1064_v43 = vmul.f32 %v1058_v32, %v1046_v27  ;;  %v1055_v20 = vmul.f32 0.5, %v1049_v33 }
 0x442   :  { %v1060_v44 = vmul.f32 0.044715, %v1048_v39  ;;  %v1051_v45 = vadd.f32 %v1282_v15, %v1039_v40  ;;  %v1038_v46 = vadd.f32 %v1025_v41, %v909_v37  ;;  %v1077_v47 = vadd.f32 %v1071_v42, %v1047_v22 }
 0x443   :  { %v1070_v48 = vmul.f32 %v1064_v43, %v1046_v27  ;;  %v1067_v49 = vmul.f32 %v1061_v38, %v1049_v33  ;;  %v1054_v28 = vmul.f32 0.5, %v1048_v39 }
 0x444   :  { %v1063_v50 = vmul.f32 0.044715, %v1051_v45  ;;  %v1050_v51 = vadd.f32 %v1282_v15, %v1038_v46  ;;  %v1066_v52 = vmul.f32 %v1060_v44, %v1048_v39  ;;  %v1083_v53 = vmul.f32 0.7978846, %v1077_v47  ;;  %v1165_v43 = vpop.permute.xlu0 %1164 }
 0x445   :  { %v1076_v54 = vadd.f32 %v1070_v48, %v1046_v27  ;;  %v1073_v55 = vmul.f32 %v1067_v49, %v1049_v33  ;;  %v1057_v31 = vmul.f32 0.5, %v1051_v45 }
 0x446   :  { %v1062_v56 = vmul.f32 0.044715, %v1050_v51  ;;  %v1072_v57 = vmul.f32 %v1066_v52, %v1048_v39  ;;  %v1069_v58 = vmul.f32 %v1063_v50, %v1051_v45  ;;  %1452 = vtanh.f32 %v1083_v53 }
 0x447   :  { %v1082_v59 = vmul.f32 0.7978846, %v1076_v54  ;;  %v1079_v60 = vadd.f32 %v1073_v55, %v1049_v33  ;;  %v1056_v26 = vmul.f32 0.5, %v1050_v51 }
 0x448   :  { %v1068_v61 = vmul.f32 %v1062_v56, %v1050_v51  ;;  %v1078_v62 = vadd.f32 %v1072_v57, %v1048_v39  ;;  %v1075_v63 = vmul.f32 %v1069_v58, %v1051_v45  ;;  %v1163_v39 = vpop.permute.xlu1 %1162 }
 0x449   :  { %1454 = vtanh.f32 %v1082_v59  ;;  %v1085_v4 = vmul.f32 0.7978846, %v1079_v60 }
 0x44a   :  { %v1074_v1 = vmul.f32 %v1068_v61, %v1050_v51  ;;  %v1084_v5 = vmul.f32 0.7978846, %v1078_v62  ;;  %v1081_v2 = vadd.f32 %v1075_v63, %v1051_v45 }
 0x44b   :  { %1456 = vtanh.f32 %v1085_v4 }
 0x44c   :  { %v1080_v6 = vadd.f32 %v1074_v1, %v1050_v51  ;;  %1458 = vtanh.f32 %v1084_v5  ;;  %v1087_v8 = vmul.f32 0.7978846, %v1081_v2 }
 0x44e   :  { %v1086_v7 = vmul.f32 0.7978846, %v1080_v6 }
 0x450   :  { %1460 = vtanh.f32 %v1086_v7 }
 0x451   :  { %1462 = vtanh.f32 %v1087_v8 }
 0x452   :  { %1464 = vtanh.f32 %v1053_v10 }
 0x453   :  { %v1453_v9 = vpop.eup %1452  ;;  %1466 = vtanh.f32 %v1052_v12 }
 0x454   :  { %v1095_v11 = vadd.f32 1.0, %v1453_v9  ;;  %1468 = vtanh.f32 %v1055_v20 }
 0x455   :  { %1470 = vtanh.f32 %v1054_v28 }
 0x456   :  { %v1455_v13 = vpop.eup %1454  ;;  %v1101_v14 = vmul.f32 %v1095_v11, %v1053_v10  ;;  %1472 = vtanh.f32 %v1056_v26 }
 0x457   :  { %v1094_v15 = vadd.f32 1.0, %v1455_v13  ;;  %1474 = vtanh.f32 %v1057_v31 }
 0x458   :  { %v1457_v16 = vpop.eup %1456  ;;  %1132 = vrot.lane.b32.xlu0 %v1101_v14, %s1524_s20 }
 0x459   :  { %v1100_v17 = vmul.f32 %v1094_v15, %v1052_v12  ;;  %v1097_v18 = vadd.f32 1.0, %v1457_v16  ;;  %v1459_v19 = vpop.eup %1458 }
 0x45a   :  { %v1096_v24 = vadd.f32 1.0, %v1459_v19 }
 0x45b   :  { %1130 = vrot.lane.b32.xlu1 %v1100_v17, %s1524_s20  ;;  %v1103_v23 = vmul.f32 %v1097_v18, %v1055_v20 }
 0x45c   :  { %v1102_v29 = vmul.f32 %v1096_v24, %v1054_v28 }
 0x45d   :  { %v1461_v21 = vpop.eup %1460 }
 0x45e   :  { %v1463_v25 = vpop.eup %1462  ;;  %v1098_v22 = vadd.f32 1.0, %v1461_v21 }
 0x45f   :  { %1136 = vrot.lane.b32.xlu1 %v1103_v23, %s1524_s20  ;;  %v1099_v30 = vadd.f32 1.0, %v1463_v25  ;;  %v1465_v33 = vpop.eup %1464 }
 0x460   :  { %v1104_v27 = vmul.f32 %v1098_v22, %v1056_v26  ;;  %v1467_v34 = vpop.eup %1466  ;;  %v1113_v35 = vadd.f32 1.0, %v1465_v33 }
 0x461   :  { %v1105_v32 = vmul.f32 %v1099_v30, %v1057_v31  ;;  %v1469_v37 = vpop.eup %1468  ;;  %v1112_v38 = vadd.f32 1.0, %v1467_v34 }
 0x462   :  { %1138 = vrot.lane.b32.xlu0 %v1104_v27, %s1524_s20  ;;  %v1119_v40 = vmul.f32 0.5, %v1113_v35  ;;  %v1471_v42 = vpop.eup %1470 }
 0x463   :  { %1134 = vrot.lane.b32.xlu1 %v1102_v29, %s1524_s20  ;;  %v1118_v41 = vmul.f32 0.5, %v1112_v38  ;;  %v1114_v47 = vadd.f32 1.0, %v1471_v42  ;;  %v1473_v49 = vpop.eup %1472 }
 0x464   :  { %v1155_v44 = vsub.f32 1.0, %v1119_v40  ;;  %v1116_v58 = vadd.f32 1.0, %v1473_v49  ;;  %v1475_v60 = vpop.eup %1474 }
 0x465   :  { %v1154_v46 = vsub.f32 1.0, %v1118_v41  ;;  %v1120_v55 = vmul.f32 0.5, %v1114_v47  ;;  %v1117_v6 = vadd.f32 1.0, %v1475_v60 }
 0x466   :  { %1168 = vrot.lane.b32.xlu0 %v1573_v0, %s1524_s20  ;;  %v1115_v0 = vadd.f32 1.0, %v1469_v37  ;;  %v1179_v50 = vmul.f32 %v1163_v39, %v1155_v44  ;;  %v1122_v1 = vmul.f32 0.5, %v1116_v58 }
 0x467   :  { %1140 = vrot.lane.b32.xlu1 %v1105_v32, %s1524_s20  ;;  %v1178_v54 = vmul.f32 %v1161_v36, %v1154_v46  ;;  %v1156_v63 = vsub.f32 1.0, %v1120_v55  ;;  %v1123_v13 = vmul.f32 0.5, %v1117_v6 }
 0x468   :  { %v1121_v45 = vmul.f32 0.5, %v1115_v0  ;;  %v1158_v10 = vsub.f32 1.0, %v1122_v1 }
 0x469   :  { %v1180_v7 = vmul.f32 %v1165_v43, %v1156_v63  ;;  %v1159_v18 = vsub.f32 1.0, %v1123_v13 }
 0x46a   :  { %v1157_v52 = vsub.f32 1.0, %v1121_v45 }
 0x46b   :  { %1170 = vrot.lane.b32.xlu1 %v1592_v3, %s1524_s20  ;;  %v1167_v3 = vpop.permute.xlu1 %1166 }
 0x46c   :  { %v1181_v62 = vmul.f32 %v1167_v3, %v1157_v52 }
 0x4ca   :  { %v1133_v48 = vpop.permute.xlu0 %1132 }
 0x4cb   :  { %v1149_v51 = vmul.f32 %v1133_v48, %v1119_v40 }
 0x4cd   :  { %v1131_v53 = vpop.permute.xlu1 %1130  ;;  %v1185_v56 = vadd.f32 %v1179_v50, %v1149_v51 }
 0x4ce   :  { %v1148_v57 = vmul.f32 %v1131_v53, %v1118_v41 }
 0x4cf   :  { %1196 = vrot.lane.b32.xlu1 %v1185_v56, %s1525_s5 }
 0x4d0   :  { %v1184_v59 = vadd.f32 %v1178_v54, %v1148_v57 }
 0x4d1   :  { %v1137_v61 = vpop.permute.xlu1 %1136 }
 0x4d2   :  { %v1151_v4 = vmul.f32 %v1137_v61, %v1121_v45  ;;  %1194 = vrot.lane.b32.xlu0 %v1184_v59, %s1525_s5 }
 0x4d4   :  { %v1187_v5 = vadd.f32 %v1181_v62, %v1151_v4  ;;  %v1139_v2 = vpop.permute.xlu0 %1138 }
 0x4d5   :  { %v1135_v8 = vpop.permute.xlu1 %1134  ;;  %v1152_v14 = vmul.f32 %v1139_v2, %v1122_v1 }
 0x4d6   :  { %v1150_v9 = vmul.f32 %v1135_v8, %v1120_v55  ;;  %1200 = vrot.lane.b32.xlu1 %v1187_v5, %s1525_s5 }
 0x4d8   :  { %v1186_v11 = vadd.f32 %v1180_v7, %v1150_v9  ;;  %v1169_v12 = vpop.permute.xlu0 %1168 }
 0x4d9   :  { %v1141_v15 = vpop.permute.xlu1 %1140  ;;  %v1182_v16 = vmul.f32 %v1169_v12, %v1158_v10 }
 0x4da   :  { %1198 = vrot.lane.b32.xlu0 %v1186_v11, %s1525_s5  ;;  %v1153_v20 = vmul.f32 %v1141_v15, %v1123_v13 }
 0x4db   :  { %v1188_v17 = vadd.f32 %v1182_v16, %v1152_v14 }
 0x4dd   :  { %v1171_v19 = vpop.permute.xlu1 %1170 }
 0x4de   :  { %v1183_v21 = vmul.f32 %v1171_v19, %v1159_v18  ;;  %1212 = vrot.lane.b32.xlu0 %v1188_v17, %s1525_s5 }
 0x4e0   :  { %v1189_v23 = vadd.f32 %v1183_v21, %v1153_v20 }
 0x4e2   :  { %1214 = vrot.lane.b32.xlu1 %v1189_v23, %s1525_s5 }
 0x541   :  { %v1197_v24 = vpop.permute.xlu1 %1196 }
 0x542   :  { %1207 = vst.msk [vmem:[#allocation2 + $0x8] sm:$0xff] %vm85_vm0, %v1197_v24 }
 0x544   :  { %v1195_v25 = vpop.permute.xlu0 %1194 }
 0x545   :  { %1206 = vst.msk [vmem:[#allocation2] sm:$0xff] %vm85_vm0, %v1195_v25 }
 0x548   :  { %v1201_v26 = vpop.permute.xlu1 %1200 }
 0x549   :  { %1209 = vst.msk [vmem:[#allocation2 + $0x18] sm:$0xff] %vm85_vm0, %v1201_v26 }
 0x54c   :  { %v1199_v22 = vpop.permute.xlu0 %1198 }
 0x54d   :  { %1208 = vst.msk [vmem:[#allocation2 + $0x10] sm:$0xff] %vm85_vm0, %v1199_v22 }
 0x54e   :  { %1487 = shalt.err (!%p1484_p4)
}
 0x54f   :  { %s1527_s23 = smov 128   ;;  %s1528_s24 = smov 8  }
 0x550   :  { %1231 = dma.vmem_to_hbm [thread:$0]  %s1226_s3, 512, %s1773_s6, [#allocation3], %s1527_s23, %s1527_s23, %s1528_s24   ;;  %v1213_v28 = vpop.permute.xlu0 %1212 }
 0x551   :  { %s1529_s27 = smov [#allocation4]   ;;  %1218 = vst.msk [vmem:[#allocation4] sm:$0xff] %vm85_vm0, %v1213_v28 }
 0x552   :  { %s1237_s28 = sshll.u32 %s1529_s27, 4  ;;  %s1238_s28 = int_to_ptr.vmem [resolvable:$true] %s1237_s28 }
 0x553   :  { %s1496_s29 = scalar_lea.vmem %s1238_s28, 256  ;;  %p1501_p6 = scmp.lt.s32.totalorder %s1238_s28, %s1238_s28 }
 0x554   :  { %v1215_v27 = vpop.permute.xlu1 %1214  ;;  %p1497_p5 = scmp.ne.s32.totalorder %s1238_s28, %s1496_s29  ;;  %p1502_p7 = scmp.lt.s32.totalorder %s1496_s29, %s1496_s29 }
 0x555   :  { %1219 = vst.msk [vmem:[#allocation4 + $0x8] sm:$0xff] %vm85_vm0, %v1215_v27 }
 0x556   :  { %p1503_p8 = por %p1502_p7, %p1501_p6 }
 0x558   :  { %p1504_p9 = pnand %p1503_p8, %p1497_p5 }
 0x55a   :  { %1507 = shalt.err (!%p1504_p9)
}
 0x55b   :  { %1243 = dma.vmem_to_hbm [thread:$0]  %s1238_s28, 256, %s1774_s7, [#allocation5], %s1527_s23, %s1527_s23, %s1528_s24  }
 0x55c   :  { %1516 = dma.done.wait [#allocation3], 512  }
 0x55d   :  { %1517 = vsyncadd [#allocation3], 4294966784 }
 0x55e   :  { %1518 = dma.done.wait [#allocation5], 256  }
 0x55f   :  { %1519 = vsyncadd [#allocation5], 4294967040 }
 0x560   :  { %1250 = vsyncpa [#allocation3], 1 }
 0x561   :  { %1251 = vsyncpa [#allocation5], 1 }

</bundles_post_ra>
